<compile_context>
chip_gen: v7x
topology: tpu7x:2x2x1
jax: 0.10.0
libtpu: 0.0.40
codegen_flags: <defaults>
</compile_context>

<pallas_src>
import math

import numpy as np
import jax
import jax.numpy as jnp
from jax import lax
from jax.experimental import pallas as pl
from jax.experimental.pallas import tpu as pltpu

KERNEL_SET = (2, 3, 6, 7)
MAX_K = 7  # largest temporal kernel -> t_out = T - 6*d


# ----------------------------------------------------------------------------
# Pallas kernel: one fused matmul + bias + gating per block of ROWS rows.
# ----------------------------------------------------------------------------
def gated_cnn_kernel(x_ref, w_ref, b_ref, o_ref):
    # x_ref : (ROWS, K_pad)       bf16   im2col'd (batch,node) rows, zero-padded K
    # w_ref : (K_pad, 2*NC_pad)   bf16   block-Toeplitz gain|gate weights (resident)
    # b_ref : (1, 2*NC_pad)       f32    per-output-column bias (gain | gate)
    # o_ref : (ROWS, NC_pad)             lane-dense gated output
    z = jnp.dot(x_ref[...], w_ref[...], preferred_element_type=jnp.float32)
    z = z + b_ref[...]                      # f32 bias add, broadcast over rows (VPU)
    nc = o_ref.shape[-1]                    # NC_pad (multiple of 128 -> aligned split)
    # TODO(synk): on v6e/v7x (bf16 EUP/VPU) casting z to bf16 here and emitting a bf16
    # output roughly doubles gating throughput / halves writeback, if downstream allows.
    gain = jnp.tanh(z[:, :nc])
    gate = jax.nn.sigmoid(z[:, nc:])
    o_ref[...] = (gain * gate).astype(o_ref.dtype)


# ----------------------------------------------------------------------------
# Parameter setup (mimics nn.Conv2d default init shapes), deterministic.
# ----------------------------------------------------------------------------
def init_inception_params(key, cin, cout):
    """Per-branch conv weights (cout_b, cin, 1, k) and biases (cout_b,)."""
    cout_b = cout // len(KERNEL_SET)
    weights, biases = [], []
    for kern in KERNEL_SET:
        key, kw, kb = jax.random.split(key, 3)
        fan_in = cin * 1 * kern
        bound = 1.0 / math.sqrt(fan_in)
        w = jax.random.uniform(kw, (cout_b, cin, 1, kern), jnp.float32, -bound, bound)
        b = jax.random.uniform(kb, (cout_b,), jnp.float32, -bound, bound)
        weights.append(w)
        biases.append(b)
    return weights, biases


def _stack_params_np(weights, biases, cin, cout):
    """Pack the 4 branch convs into (7*cin, cout) tap-stacked weight + (cout,) bias.

    Row block s*cin:(s+1)*cin holds temporal tap s; the branch with kernel size
    `kern` places its tap k at s = 7 - kern + k (matches PyTorch's x[..., -t_out:]).
    """
    cout_b = cout // len(KERNEL_SET)
    W = np.zeros((MAX_K, cin, cout), np.float32)
    for bi, kern in enumerate(KERNEL_SET):
        w = np.asarray(weights[bi])                     # (cout_b, cin, 1, kern)
        for k in range(kern):
            s = MAX_K - kern + k
            W[s, :, bi * cout_b:(bi + 1) * cout_b] = w[:, :, 0, k].T
    bias = np.concatenate([np.asarray(b) for b in biases])
    return W.reshape(MAX_K * cin, cout), bias


def pack_gated_cnn_params(gain_params, gate_params, cin, cout, T, dilation):
    """Host-side, one-time packing of both inceptions into a fused block-Toeplitz
    weight (K_pad, 2*NC_pad) bf16 and a fused bias (1, 2*NC_pad) f32.

    Call once per weight update (NOT per forward) — this is plain numpy, so the
    packing never shows up in the jitted forward path.
    # TODO(synk): for long T, ~ (T-7)/T of the weight rows per output time are zero;
    # a banded (t_out-tiled) formulation would cut MXU FLOPs / VMEM by ~T/7.
    """
    t_out = T - dilation * (MAX_K - 1)
    assert t_out > 0, "time axis too short for dilation"
    NC = t_out * cout
    K_raw = T * cin
    K_pad = ((K_raw + 127) // 128) * 128                # MXU-aligned contraction dim
    NC_pad = ((NC + 127) // 128) * 128                  # lane-aligned gain/gate halves

    Wg, bg = _stack_params_np(*gain_params, cin, cout)
    Wt, bt = _stack_params_np(*gate_params, cin, cout)

    W = np.zeros((K_pad, 2 * NC_pad), np.float32)
    bias = np.zeros((1, 2 * NC_pad), np.float32)
    for t in range(t_out):
        for s in range(MAX_K):
            r0 = (t + s * dilation) * cin
            W[r0:r0 + cin, t * cout:(t + 1) * cout] = Wg[s * cin:(s + 1) * cin]
            W[r0:r0 + cin, NC_pad + t * cout:NC_pad + (t + 1) * cout] = Wt[s * cin:(s + 1) * cin]
        bias[0, t * cout:(t + 1) * cout] = bg
        bias[0, NC_pad + t * cout:NC_pad + (t + 1) * cout] = bt

    return jnp.asarray(W, jnp.bfloat16), jnp.asarray(bias, jnp.float32)


# ----------------------------------------------------------------------------
# Wrapper: layout plumbing + pallas_call.
# ----------------------------------------------------------------------------
def gated_cnn_pallas(x_nchw, w_big, bias, dilation, cout, rows=512,
                     out_dtype=jnp.float32):
    B, Cin, N, T = x_nchw.shape
    t_out = T - dilation * (MAX_K - 1)
    NC = t_out * cout
    K_pad = w_big.shape[0]
    NC_pad = bias.shape[-1] // 2
    assert w_big.shape[1] == 2 * NC_pad
    assert K_pad % 128 == 0 and NC_pad % 128 == 0
    assert K_pad >= T * Cin and NC_pad >= NC

    R = B * N
    R8 = ((R + 7) // 8) * 8
    ROWS = min(rows, R8)
    if ROWS >= R8 and R8 >= 512:
        # Keep >=2 "parallel" row blocks (each still >=256 rows) so both v7x
        # TensorCores get work; on single-TC v5e/v6e this costs one ~0.35us step.
        ROWS = ((R8 // 2 + 7) // 8) * 8
    R_pad = pl.cdiv(R, ROWS) * ROWS

    # NCHW -> (B*N, T*Cin) bf16 rows, zero-padded to (R_pad, K_pad) in one pad pass.
    # TODO(synk): keeping activations channels-last (B,N,T,C) between MTGNN layers
    # would remove this transpose and the final one entirely.
    x2 = jnp.transpose(x_nchw, (0, 2, 3, 1)).reshape(R, T * Cin).astype(jnp.bfloat16)
    x2 = jnp.pad(x2, ((0, R_pad - R), (0, K_pad - T * Cin)))

    out2 = pl.pallas_call(
        gated_cnn_kernel,
        out_shape=jax.ShapeDtypeStruct((R_pad, NC_pad), out_dtype),
        grid=(R_pad // ROWS,),
        in_specs=[
            pl.BlockSpec((ROWS, K_pad), lambda i: (i, 0)),          # row block of x
            pl.BlockSpec((K_pad, 2 * NC_pad), lambda i: (0, 0),     # resident weight,
                         pipeline_mode=pl.Buffered(1)),             # single-buffered
            pl.BlockSpec((1, 2 * NC_pad), lambda i: (0, 0)),        # f32 bias
        ],
        out_specs=pl.BlockSpec((ROWS, NC_pad), lambda i: (i, 0)),
        compiler_params=pltpu.CompilerParams(
            dimension_semantics=("parallel",),
            vmem_limit_bytes=48 * 1024 * 1024,  # fits v7x's 64 MiB; << v5e/v6e 128 MiB
        ),
    )(x2, w_big, bias)

    # Padded rows/lanes hold tanh(b)*sigmoid(b) / zero garbage — the [:R, :NC] slice
    # below is required for correctness; do not remove it.
    return out2[:R, :NC].reshape(B, N, t_out, cout).transpose(0, 3, 1, 2)


# ----------------------------------------------------------------------------
# Pure-JAX reference (mirrors the PyTorch forward exactly), for validation.
# ----------------------------------------------------------------------------
def dilated_inception_ref(x, weights, biases, dilation):
    outs = []
    for w, b in zip(weights, biases):
        y = lax.conv_general_dilated(
            x, w, window_strides=(1, 1), padding="VALID",
            rhs_dilation=(1, dilation),
            dimension_numbers=("NCHW", "OIHW", "NCHW"))
        outs.append(y + b[None, :, None, None])
    t_out = outs[-1].shape[3]
    outs = [o[..., -t_out:] for o in outs]
    return jnp.concatenate(outs, axis=1)


def gated_cnn_ref(x, gain_params, gate_params, dilation):
    gain = jnp.tanh(dilated_inception_ref(x, *gain_params, dilation))
    gate = jax.nn.sigmoid(dilated_inception_ref(x, *gate_params, dilation))
    return gain * gate


# ----------------------------------------------------------------------------
if __name__ == "__main__":
    B, Cin, N, T = 8, 16, 64, 28
    Cout, dilation = 16, 2          # t_out = 28 - 12 = 16 ; NC = t_out*Cout = 256 lanes

    key = jax.random.PRNGKey(0)
    kx, kgain, kgate = jax.random.split(key, 3)
    x = jax.random.normal(kx, (B, Cin, N, T), jnp.float32)

    gain_params = init_inception_params(kgain, Cin, Cout)
    gate_params = init_inception_params(kgate, Cin, Cout)

    # One-time host-side packing (reused across forwards; redo only on weight updates).
    Wbig, bias = pack_gated_cnn_params(gain_params, gate_params, Cin, Cout, T, dilation)

    gated_cnn_jit = jax.jit(gated_cnn_pallas, static_argnums=(3, 4, 5))
    out = gated_cnn_jit(x, Wbig, bias, dilation, Cout, 512)
    out = jax.block_until_ready(out)

    ref = gated_cnn_ref(x, gain_params, gate_params, dilation)
    assert out.shape == ref.shape, (out.shape, ref.shape)
    max_err = float(jnp.max(jnp.abs(out - ref)))
    # bf16 MXU operands with f32 accumulation (bias added in f32) -> relaxed tolerance.
    assert jnp.allclose(out, ref, atol=3e-2, rtol=1e-2), max_err

    print("KERNEL_OK")
</pallas_src>

<mosaic_0001>
module attributes {stable_mosaic.version = 11 : i64} {
  func.func @gated_cnn_kernel(%arg0: i32, %arg1: memref<256x512xbf16, #tpu.memory_space<vmem>>, %arg2: memref<512x512xbf16, #tpu.memory_space<vmem>>, %arg3: memref<1x512xf32, #tpu.memory_space<vmem>>, %arg4: memref<256x256xf32, #tpu.memory_space<vmem>>) attributes {dimension_semantics = [#tpu.dimension_semantics<parallel>], iteration_bounds = array<i64: 2>, scalar_prefetch = 0 : i64, scratch_operands = 0 : i64, tpu.core_type = #tpu.core_type<tc>, window_params = [{transform_indices = @transform_0, window_bounds = array<i64: 256, 512>}, {pipeline_mode = #tpu.pipeline_mode<synchronous>, transform_indices = @transform_1, window_bounds = array<i64: 512, 512>}, {pipeline_mode = #tpu.pipeline_mode<synchronous>, transform_indices = @transform_2, window_bounds = array<i64: 1, 512>}, {transform_indices = @transform_3, window_bounds = array<i64: 256, 256>}]} {
    %c0 = arith.constant 0 : index
    %c0_0 = arith.constant 0 : index
    %0 = vector.load %arg1[%c0, %c0_0] : memref<256x512xbf16, #tpu.memory_space<vmem>>, vector<256x512xbf16>
    %c0_1 = arith.constant 0 : index
    %c0_2 = arith.constant 0 : index
    %1 = vector.load %arg2[%c0_1, %c0_2] : memref<512x512xbf16, #tpu.memory_space<vmem>>, vector<512x512xbf16>
    %cst = arith.constant dense<0.000000e+00> : vector<256x512xf32>
    %2 = tpu.matmul %0, %1, %cst {dimension_numbers = #tpu.dot_dimension_numbers<[1], [0], [0], [1], [0, 0, 1, 1], [], []>} : vector<256x512xbf16>, vector<512x512xbf16>, vector<256x512xf32> -> vector<256x512xf32>
    %c0_3 = arith.constant 0 : index
    %c0_4 = arith.constant 0 : index
    %3 = vector.load %arg3[%c0_3, %c0_4] : memref<1x512xf32, #tpu.memory_space<vmem>>, vector<1x512xf32>
    %4 = vector.broadcast %3 : vector<1x512xf32> to vector<256x512xf32>
    %5 = arith.addf %2, %4 : vector<256x512xf32>
    %6 = vector.extract_strided_slice %5 {offsets = [0, 0], sizes = [256, 256], strides = [1, 1]} : vector<256x512xf32> to vector<256x256xf32>
    %7 = math.tanh %6 : vector<256x256xf32>
    %8 = vector.extract_strided_slice %5 {offsets = [0, 256], sizes = [256, 256], strides = [1, 1]} : vector<256x512xf32> to vector<256x256xf32>
    %9 = arith.negf %8 : vector<256x256xf32>
    %10 = math.exp %9 : vector<256x256xf32>
    %cst_5 = arith.constant 1.000000e+00 : f32
    %11 = vector.broadcast %cst_5 : f32 to vector<256x256xf32>
    %12 = arith.addf %11, %10 : vector<256x256xf32>
    %13 = arith.divf %11, %12 : vector<256x256xf32>
    %14 = arith.mulf %7, %13 : vector<256x256xf32>
    %c0_6 = arith.constant 0 : index
    %c0_7 = arith.constant 0 : index
    %15 = vector.load %arg4[%c0_6, %c0_7] : memref<256x256xf32, #tpu.memory_space<vmem>>, vector<256x256xf32>
    tpu.vector_store %arg4[%c0_6, %c0_7], %14 {strides = array<i32>} : memref<256x256xf32, #tpu.memory_space<vmem>>, vector<256x256xf32>,
    return
  }
  func.func @transform_0(%arg0: i32) -> (i32, i32) {
    %c0_i32 = arith.constant 0 : i32
    %c0_i32_0 = arith.constant 0 : i32
    return %arg0, %c0_i32 : i32, i32
  }
  func.func @transform_1(%arg0: i32) -> (i32, i32) {
    %c0_i32 = arith.constant 0 : i32
    %c0_i32_0 = arith.constant 0 : i32
    %c0_i32_1 = arith.constant 0 : i32
    return %c0_i32, %c0_i32_0 : i32, i32
  }
  func.func @transform_2(%arg0: i32) -> (i32, i32) {
    %c0_i32 = arith.constant 0 : i32
    %c0_i32_0 = arith.constant 0 : i32
    %c0_i32_1 = arith.constant 0 : i32
    return %c0_i32, %c0_i32_0 : i32, i32
  }
  func.func @transform_3(%arg0: i32) -> (i32, i32) {
    %c0_i32 = arith.constant 0 : i32
    %c0_i32_0 = arith.constant 0 : i32
    return %arg0, %c0_i32 : i32, i32
  }
}

</mosaic_0001>

<bundles_post_ra>
// kernel: gated_cnn_pallas.1
= control target key start
LH: loop header
LB: loop body
LE: loop exit
PB: predicated region body
PF: predicated region fallthrough
CT: control target
= control target key end

     0   :  { %s3994_s12 = smov 0   ;;  %s4978_s0 = inlined_call_operand.vmem [shape: bf16[512,512], index: 0, kind: input, shape index: {}]   ;;  %s4979_s1 = inlined_call_operand.vmem [shape: bf16[512,512], index: 1, kind: input, shape index: {}]   ;;  %s4980_s2 = inlined_call_operand.vmem [shape: f32[1,512], index: 2, kind: input, shape index: {}]   ;;  %s4981_s3 = inlined_call_operand.vmem [shape: f32[512,256], index: 3, kind: output, shape index: {}]  }
   0x1 LB: > { %s2759_s13 = sadd.s32 4294967295, %s3972_s12   ;;  %p2763_p0 = scmp.ge.s32.totalorder %s3972_s12, 1  ;;  %s3972_s12 = sphi %s3994_s12, %s13_s12  }
   0x2   : > { %p139_p1 = scmp.lt.s32.totalorder %s3972_s12, 3 }
   0x4   : > { %p140_p2 = pnand %p2763_p0, %p139_p1 }
   0x6   : > { %143 = sbr.rel (%p140_p2) target bundleno = 636 (0x27c), region = 32 }
   0xd   : > { %v3294_v0 = vld [vmem:[%s4979_s1 + $0x4] ss:$16 sps:$4 sm:$0xff]   ;;  %v3296_v1 = vld [vmem:[%s4979_s1 + $0xc] ss:$16 sps:$4 sm:$0xff]   ;;  %v3298_v2 = vld [vmem:[%s4979_s1] ss:$16 sps:$4 sm:$0xff]  }
   0xe   : > { %1353 = vmatprep.subr.bf16.mxu0 %v3294_v0  ;;  %v3299_v3 = vld [vmem:[%s4979_s1 + $0x8] ss:$16 sps:$4 sm:$0xff]   ;;  %1739 = vmatprep.subr.bf16.mxu1 %v3296_v1  ;;  %v3300_v4 = vld [vmem:[%s4979_s1 + $0x24] ss:$16 sps:$4 sm:$0xff]   ;;  %v3302_v5 = vld [vmem:[%s4979_s1 + $0x2c] ss:$16 sps:$4 sm:$0xff]  }
   0xf   : > { %1354 = vmatpush1.bf16.msra.mxu0 %v3298_v2  ;;  %1740 = vmatpush1.bf16.msra.mxu1 %v3299_v3  ;;  %v3304_v6 = vld [vmem:[%s4979_s1 + $0x20] ss:$16 sps:$4 sm:$0xff]   ;;  %v3305_v7 = vld [vmem:[%s4979_s1 + $0x28] ss:$16 sps:$4 sm:$0xff]   ;;  %v3306_v8 = vld [vmem:[%s4979_s1 + $0x44] ss:$16 sps:$4 sm:$0xff]  }
  0x10   : > { %1355 = vmatprep.subr.bf16.mxu0 %v3300_v4  ;;  %1741 = vmatprep.subr.bf16.mxu1 %v3302_v5  ;;  %v3308_v9 = vld [vmem:[%s4979_s1 + $0x4c] ss:$16 sps:$4 sm:$0xff]   ;;  %v3310_v10 = vld [vmem:[%s4979_s1 + $0x40] ss:$16 sps:$4 sm:$0xff]   ;;  %v3311_v11 = vld [vmem:[%s4979_s1 + $0x48] ss:$16 sps:$4 sm:$0xff]  }
  0x11   : > { %v3312_v12 = vld [vmem:[%s4979_s1 + $0x64] ss:$16 sps:$4 sm:$0xff]   ;;  %v3314_v13 = vld [vmem:[%s4979_s1 + $0x6c] ss:$16 sps:$4 sm:$0xff]   ;;  %v3316_v14 = vld [vmem:[%s4979_s1 + $0x60] ss:$16 sps:$4 sm:$0xff]  }
  0x12   : > { %v3317_v15 = vld [vmem:[%s4979_s1 + $0x68] ss:$16 sps:$4 sm:$0xff]   ;;  %v3318_v16 = vld [vmem:[%s4979_s1 + $0x84] ss:$16 sps:$4 sm:$0xff]   ;;  %v3320_v17 = vld [vmem:[%s4979_s1 + $0x8c] ss:$16 sps:$4 sm:$0xff]  }
  0x13   : > { %1356 = vmatpush1.bf16.msra.mxu0 %v3304_v6  ;;  %1742 = vmatpush1.bf16.msra.mxu1 %v3305_v7  ;;  %v3322_v18 = vld [vmem:[%s4979_s1 + $0x80] ss:$16 sps:$4 sm:$0xff]   ;;  %v3323_v19 = vld [vmem:[%s4979_s1 + $0x88] ss:$16 sps:$4 sm:$0xff]   ;;  %v3324_v20 = vld [vmem:[%s4979_s1 + $0xa4] ss:$16 sps:$4 sm:$0xff]  }
  0x14   : > { %1357 = vmatprep.subr.bf16.mxu0 %v3306_v8  ;;  %1743 = vmatprep.subr.bf16.mxu1 %v3308_v9  ;;  %v3326_v21 = vld [vmem:[%s4979_s1 + $0xac] ss:$16 sps:$4 sm:$0xff]   ;;  %v3328_v22 = vld [vmem:[%s4979_s1 + $0xa0] ss:$16 sps:$4 sm:$0xff]   ;;  %v3329_v23 = vld [vmem:[%s4979_s1 + $0xa8] ss:$16 sps:$4 sm:$0xff]  }
  0x15   : > { %v3330_v24 = vld [vmem:[%s4979_s1 + $0xc4] ss:$16 sps:$4 sm:$0xff]   ;;  %v3332_v25 = vld [vmem:[%s4979_s1 + $0xcc] ss:$16 sps:$4 sm:$0xff]   ;;  %v3334_v26 = vld [vmem:[%s4979_s1 + $0xc0] ss:$16 sps:$4 sm:$0xff]  }
  0x16   : > { %v3335_v27 = vld [vmem:[%s4979_s1 + $0xc8] ss:$16 sps:$4 sm:$0xff]   ;;  %v3336_v28 = vld [vmem:[%s4979_s1 + $0xe4] ss:$16 sps:$4 sm:$0xff]   ;;  %v3338_v29 = vld [vmem:[%s4979_s1 + $0xec] ss:$16 sps:$4 sm:$0xff]  }
  0x17   : > { %1358 = vmatpush1.bf16.msra.mxu0 %v3310_v10  ;;  %1744 = vmatpush1.bf16.msra.mxu1 %v3311_v11  ;;  %s2764_s24 = sshll.u32 %s2759_s13, 5  ;;  %v3340_v30 = vld [vmem:[%s4979_s1 + $0xe0] ss:$16 sps:$4 sm:$0xff]   ;;  %v3341_v31 = vld [vmem:[%s4979_s1 + $0xe8] ss:$16 sps:$4 sm:$0xff]  }
  0x18   : > { %1359 = vmatprep.subr.bf16.mxu0 %v3312_v12  ;;  %1745 = vmatprep.subr.bf16.mxu1 %v3314_v13  ;;  %v3342_v32 = vld [vmem:[%s4979_s1 + $0x104] ss:$16 sps:$4 sm:$0xff]   ;;  %v3344_v33 = vld [vmem:[%s4979_s1 + $0x10c] ss:$16 sps:$4 sm:$0xff]   ;;  %p166_p3 = scmp.lt.s32.totalorder %s2764_s24, 63 }
  0x19   : > { %v3346_v34 = vld [vmem:[%s4979_s1 + $0x100] ss:$16 sps:$4 sm:$0xff]   ;;  %v3347_v35 = vld [vmem:[%s4979_s1 + $0x108] ss:$16 sps:$4 sm:$0xff]   ;;  %v3348_v36 = vld [vmem:[%s4979_s1 + $0x124] ss:$16 sps:$4 sm:$0xff]  }
  0x1a   : > { %v3350_v37 = vld [vmem:[%s4979_s1 + $0x12c] ss:$16 sps:$4 sm:$0xff]   ;;  %s4985_s24 = smov (!%p166_p3, %s2764_s24), 63  ;;  %v3352_v38 = vld [vmem:[%s4979_s1 + $0x120] ss:$16 sps:$4 sm:$0xff]  }
  0x1b   : > { %1360 = vmatpush1.bf16.msra.mxu0 %v3316_v14  ;;  %1746 = vmatpush1.bf16.msra.mxu1 %v3317_v15  ;;  %v3353_v39 = vld [vmem:[%s4979_s1 + $0x128] ss:$16 sps:$4 sm:$0xff]   ;;  %v3354_v40 = vld [vmem:[%s4979_s1 + $0x144] ss:$16 sps:$4 sm:$0xff]   ;;  %v3356_v41 = vld [vmem:[%s4979_s1 + $0x14c] ss:$16 sps:$4 sm:$0xff]  }
  0x1c   : > { %1361 = vmatprep.subr.bf16.mxu0 %v3318_v16  ;;  %1747 = vmatprep.subr.bf16.mxu1 %v3320_v17  ;;  %s3028_s23 = sshll.u32 %s4985_s24, 4  ;;  %v3358_v42 = vld [vmem:[%s4979_s1 + $0x140] ss:$16 sps:$4 sm:$0xff]   ;;  %v3359_v43 = vld [vmem:[%s4979_s1 + $0x148] ss:$16 sps:$4 sm:$0xff]  }
  0x1d   : > { %v3360_v44 = vld [vmem:[%s4979_s1 + $0x164] ss:$16 sps:$4 sm:$0xff]   ;;  %s4147_s13 = scalar_lea.vmem %s4978_s0, %s3028_s23  ;;  %v3362_v45 = vld [vmem:[%s4979_s1 + $0x16c] ss:$16 sps:$4 sm:$0xff]   ;;  %v3364_v46 = vld [vmem:[%s4979_s1 + $0x160] ss:$16 sps:$4 sm:$0xff]   ;;  %s4515_s16 = scalar_lea.vmem %s4981_s3, %s3028_s23 }
  0x1e   : > { %v3365_v47 = vld [vmem:[%s4979_s1 + $0x168] ss:$16 sps:$4 sm:$0xff]   ;;  %v3392_v48 = vld [vmem:[%s4147_s13 + $0x4] ss:$16 sps:$4 sm:$0xff]   ;;  %v3368_v50 = vld [vmem:[%s4979_s1 + $0x18c] ss:$16 sps:$4 sm:$0xff]  }
  0x1f   : > { %1362 = vmatpush1.bf16.msra.mxu0 %v3322_v18  ;;  %1748 = vmatpush1.bf16.msra.mxu1 %v3323_v19  ;;  %v3366_v49 = vld [vmem:[%s4979_s1 + $0x184] ss:$16 sps:$4 sm:$0xff]   ;;  %v3370_v51 = vld [vmem:[%s4979_s1 + $0x180] ss:$16 sps:$4 sm:$0xff]   ;;  %v3371_v52 = vld [vmem:[%s4979_s1 + $0x188] ss:$16 sps:$4 sm:$0xff]  }
  0x20   : > { %1363 = vmatprep.subr.bf16.mxu0 %v3324_v20  ;;  %1749 = vmatprep.subr.bf16.mxu1 %v3326_v21  ;;  %v3372_v53 = vld [vmem:[%s4979_s1 + $0x1a4] ss:$16 sps:$4 sm:$0xff]   ;;  %v3374_v54 = vld [vmem:[%s4979_s1 + $0x1ac] ss:$16 sps:$4 sm:$0xff]   ;;  %v3376_v55 = vld [vmem:[%s4979_s1 + $0x1a0] ss:$16 sps:$4 sm:$0xff]  }
  0x21   : > { %1385 = vmatprep.mubr.bf16.mxu0 %v3392_v48  ;;  %1771 = vmatprep.mubr.bf16.mxu1 %v3392_v48  ;;  %v3377_v56 = vld [vmem:[%s4979_s1 + $0x1a8] ss:$16 sps:$4 sm:$0xff]   ;;  %v3378_v57 = vld [vmem:[%s4979_s1 + $0x1c4] ss:$16 sps:$4 sm:$0xff]   ;;  %v3380_v58 = vld [vmem:[%s4979_s1 + $0x1cc] ss:$16 sps:$4 sm:$0xff]  }
  0x22   : > { %v3382_v59 = vld [vmem:[%s4979_s1 + $0x1c0] ss:$16 sps:$4 sm:$0xff]   ;;  %v3383_v60 = vld [vmem:[%s4979_s1 + $0x1c8] ss:$16 sps:$4 sm:$0xff]   ;;  %v3384_v61 = vld [vmem:[%s4979_s1 + $0x1e4] ss:$16 sps:$4 sm:$0xff]  }
  0x23   : > { %1364 = vmatpush1.bf16.msra.mxu0 %v3328_v22  ;;  %1750 = vmatpush1.bf16.msra.mxu1 %v3329_v23  ;;  %v3386_v62 = vld [vmem:[%s4979_s1 + $0x1ec] ss:$16 sps:$4 sm:$0xff]   ;;  %v3388_v63 = vld [vmem:[%s4979_s1 + $0x1e0] ss:$16 sps:$4 sm:$0xff]   ;;  %v3389_v0 = vld [vmem:[%s4979_s1 + $0x1e8] ss:$16 sps:$4 sm:$0xff]  }
  0x24   : > { %1365 = vmatprep.subr.bf16.mxu0 %v3330_v24  ;;  %1751 = vmatprep.subr.bf16.mxu1 %v3332_v25  ;;  %v3395_v1 = vld [vmem:[%s4979_s1 + $0x20c] ss:$16 sps:$4 sm:$0xff]   ;;  %v3406_v2 = vld [vmem:[%s4979_s1 + $0x204] ss:$16 sps:$4 sm:$0xff]   ;;  %v3390_v3 = vld [vmem:[%s4147_s13] ss:$16 sps:$4 sm:$0xff]  }
  0x25   : > { %v3393_v4 = vld [vmem:[%s4979_s1 + $0x208] ss:$16 sps:$4 sm:$0xff]   ;;  %v3396_v5 = vld [vmem:[%s4147_s13 + $0x24] ss:$16 sps:$4 sm:$0xff]   ;;  %v3401_v6 = vld [vmem:[%s4979_s1 + $0x22c] ss:$16 sps:$4 sm:$0xff]  }
  0x26   : > { %v3404_v7 = vld [vmem:[%s4979_s1 + $0x200] ss:$16 sps:$4 sm:$0xff]   ;;  %v3415_v8 = vld [vmem:[%s4979_s1 + $0x224] ss:$16 sps:$4 sm:$0xff]   ;;  %v3399_v9 = vld [vmem:[%s4979_s1 + $0x228] ss:$16 sps:$4 sm:$0xff]  }
  0x27   : > { %1366 = vmatpush1.bf16.msra.mxu0 %v3334_v26  ;;  %1752 = vmatpush1.bf16.msra.mxu1 %v3335_v27  ;;  %v3410_v10 = vld [vmem:[%s4979_s1 + $0x24c] ss:$16 sps:$4 sm:$0xff]   ;;  %v3413_v11 = vld [vmem:[%s4979_s1 + $0x220] ss:$16 sps:$4 sm:$0xff]   ;;  %v3402_v13 = vld [vmem:[%s4147_s13 + $0x44] ss:$16 sps:$4 sm:$0xff]  }
  0x28   : > { %1367 = vmatprep.subr.bf16.mxu0 %v3336_v28  ;;  %1753 = vmatprep.subr.bf16.mxu1 %v3338_v29  ;;  %v3398_v12 = vld [vmem:[%s4147_s13 + $0x20] ss:$16 sps:$4 sm:$0xff]   ;;  %v3408_v14 = vld [vmem:[%s4979_s1 + $0x248] ss:$16 sps:$4 sm:$0xff]   ;;  %v3424_v15 = vld [vmem:[%s4979_s1 + $0x244] ss:$16 sps:$4 sm:$0xff]  }
  0x29   : > { %v3419_v16 = vld [vmem:[%s4979_s1 + $0x26c] ss:$16 sps:$4 sm:$0xff]   ;;  %v3422_v17 = vld [vmem:[%s4979_s1 + $0x240] ss:$16 sps:$4 sm:$0xff]   ;;  %v3433_v18 = vld [vmem:[%s4979_s1 + $0x264] ss:$16 sps:$4 sm:$0xff]  }
  0x2a   : > { %v3417_v19 = vld [vmem:[%s4979_s1 + $0x268] ss:$16 sps:$4 sm:$0xff]   ;;  %v3428_v20 = vld [vmem:[%s4979_s1 + $0x28c] ss:$16 sps:$4 sm:$0xff]   ;;  %v3431_v21 = vld [vmem:[%s4979_s1 + $0x260] ss:$16 sps:$4 sm:$0xff]  }
  0x2b   : > { %1368 = vmatpush1.bf16.msra.mxu0 %v3340_v30  ;;  %1754 = vmatpush1.bf16.msra.mxu1 %v3341_v31  ;;  %v3407_v22 = vld [vmem:[%s4147_s13 + $0x40] ss:$16 sps:$4 sm:$0xff]   ;;  %v3411_v23 = vld [vmem:[%s4147_s13 + $0x64] ss:$16 sps:$4 sm:$0xff]   ;;  %v3426_v24 = vld [vmem:[%s4979_s1 + $0x288] ss:$16 sps:$4 sm:$0xff]  }
  0x2c   : > { %1369 = vmatprep.subr.bf16.mxu0 %v3342_v32  ;;  %1755 = vmatprep.subr.bf16.mxu1 %v3344_v33  ;;  %v3442_v25 = vld [vmem:[%s4979_s1 + $0x284] ss:$16 sps:$4 sm:$0xff]   ;;  %v3437_v26 = vld [vmem:[%s4979_s1 + $0x2ac] ss:$16 sps:$4 sm:$0xff]   ;;  %v3440_v27 = vld [vmem:[%s4979_s1 + $0x280] ss:$16 sps:$4 sm:$0xff]  }
  0x2d   : > { %v3451_v28 = vld [vmem:[%s4979_s1 + $0x2a4] ss:$16 sps:$4 sm:$0xff]   ;;  %v3435_v29 = vld [vmem:[%s4979_s1 + $0x2a8] ss:$16 sps:$4 sm:$0xff]   ;;  %v3446_v30 = vld [vmem:[%s4979_s1 + $0x2cc] ss:$16 sps:$4 sm:$0xff]  }
  0x2e   : > { %v3449_v31 = vld [vmem:[%s4979_s1 + $0x2a0] ss:$16 sps:$4 sm:$0xff]   ;;  %v3420_v33 = vld [vmem:[%s4147_s13 + $0x84] ss:$16 sps:$4 sm:$0xff]  }
  0x2f   : > { %1370 = vmatpush1.bf16.msra.mxu0 %v3346_v34  ;;  %1756 = vmatpush1.bf16.msra.mxu1 %v3347_v35  ;;  %v3416_v32 = vld [vmem:[%s4147_s13 + $0x60] ss:$16 sps:$4 sm:$0xff]   ;;  %v3444_v34 = vld [vmem:[%s4979_s1 + $0x2c8] ss:$16 sps:$4 sm:$0xff]   ;;  %v3460_v35 = vld [vmem:[%s4979_s1 + $0x2c4] ss:$16 sps:$4 sm:$0xff]  }
  0x30   : > { %1371 = vmatprep.subr.bf16.mxu0 %v3348_v36  ;;  %1757 = vmatprep.subr.bf16.mxu1 %v3350_v37  ;;  %v3455_v36 = vld [vmem:[%s4979_s1 + $0x2ec] ss:$16 sps:$4 sm:$0xff]   ;;  %v3458_v37 = vld [vmem:[%s4979_s1 + $0x2c0] ss:$16 sps:$4 sm:$0xff]   ;;  %v3487_v48 = vld [vmem:[%s4979_s1 + $0x324] ss:$16 sps:$4 sm:$0xff]  }
  0x33   : > { %1372 = vmatpush1.bf16.msra.mxu0 %v3352_v38  ;;  %1758 = vmatpush1.bf16.msra.mxu1 %v3353_v39  ;;  %v3469_v38 = vld [vmem:[%s4979_s1 + $0x2e4] ss:$16 sps:$4 sm:$0xff]   ;;  %v3453_v39 = vld [vmem:[%s4979_s1 + $0x2e8] ss:$16 sps:$4 sm:$0xff]  }
  0x34   : > { %1373 = vmatprep.subr.bf16.mxu0 %v3354_v40  ;;  %1759 = vmatprep.subr.bf16.mxu1 %v3356_v41  ;;  %v3464_v40 = vld [vmem:[%s4979_s1 + $0x30c] ss:$16 sps:$4 sm:$0xff]   ;;  %v3467_v41 = vld [vmem:[%s4979_s1 + $0x2e0] ss:$16 sps:$4 sm:$0xff]  }
  0x37   : > { %1374 = vmatpush1.bf16.msra.mxu0 %v3358_v42  ;;  %1760 = vmatpush1.bf16.msra.mxu1 %v3359_v43  ;;  %v3425_v42 = vld [vmem:[%s4147_s13 + $0x80] ss:$16 sps:$4 sm:$0xff]   ;;  %v3429_v43 = vld [vmem:[%s4147_s13 + $0xa4] ss:$16 sps:$4 sm:$0xff]  }
  0x38   : > { %1375 = vmatprep.subr.bf16.mxu0 %v3360_v44  ;;  %1761 = vmatprep.subr.bf16.mxu1 %v3362_v45  ;;  %v3462_v44 = vld [vmem:[%s4979_s1 + $0x308] ss:$16 sps:$4 sm:$0xff]   ;;  %v3478_v45 = vld [vmem:[%s4979_s1 + $0x304] ss:$16 sps:$4 sm:$0xff]  }
  0x3b   : > { %1376 = vmatpush1.bf16.msra.mxu0 %v3364_v46  ;;  %1762 = vmatpush1.bf16.msra.mxu1 %v3365_v47  ;;  %v3473_v46 = vld [vmem:[%s4979_s1 + $0x32c] ss:$16 sps:$4 sm:$0xff]   ;;  %v3476_v47 = vld [vmem:[%s4979_s1 + $0x300] ss:$16 sps:$4 sm:$0xff]  }
  0x3c   : > { %1377 = vmatprep.subr.bf16.mxu0 %v3366_v49  ;;  %1763 = vmatprep.subr.bf16.mxu1 %v3368_v50  ;;  %v3471_v49 = vld [vmem:[%s4979_s1 + $0x328] ss:$16 sps:$4 sm:$0xff]   ;;  %v3482_v50 = vld [vmem:[%s4979_s1 + $0x34c] ss:$16 sps:$4 sm:$0xff]  }
  0x3f   : > { %1378 = vmatpush1.bf16.msra.mxu0 %v3370_v51  ;;  %1764 = vmatpush1.bf16.msra.mxu1 %v3371_v52  ;;  %v3485_v51 = vld [vmem:[%s4979_s1 + $0x320] ss:$16 sps:$4 sm:$0xff]  }
  0x40   : > { %1379 = vmatprep.subr.bf16.mxu0 %v3372_v53  ;;  %1765 = vmatprep.subr.bf16.mxu1 %v3374_v54  ;;  %v3434_v52 = vld [vmem:[%s4147_s13 + $0xa0] ss:$16 sps:$4 sm:$0xff]   ;;  %v3438_v53 = vld [vmem:[%s4147_s13 + $0xc4] ss:$16 sps:$4 sm:$0xff]   ;;  %v3480_v54 = vld [vmem:[%s4979_s1 + $0x348] ss:$16 sps:$4 sm:$0xff]  }
  0x43   : > { %1380 = vmatpush1.bf16.msra.mxu0 %v3376_v55  ;;  %1766 = vmatpush1.bf16.msra.mxu1 %v3377_v56  ;;  %v3496_v55 = vld [vmem:[%s4979_s1 + $0x344] ss:$16 sps:$4 sm:$0xff]   ;;  %v3491_v56 = vld [vmem:[%s4979_s1 + $0x36c] ss:$16 sps:$4 sm:$0xff]  }
  0x44   : > { %1381 = vmatprep.subr.bf16.mxu0 %v3378_v57  ;;  %1767 = vmatprep.subr.bf16.mxu1 %v3380_v58  ;;  %v3494_v57 = vld [vmem:[%s4979_s1 + $0x340] ss:$16 sps:$4 sm:$0xff]   ;;  %v3505_v58 = vld [vmem:[%s4979_s1 + $0x364] ss:$16 sps:$4 sm:$0xff]  }
  0x47   : > { %1382 = vmatpush1.bf16.msra.mxu0 %v3382_v59  ;;  %1768 = vmatpush1.bf16.msra.mxu1 %v3383_v60  ;;  %v3489_v59 = vld [vmem:[%s4979_s1 + $0x368] ss:$16 sps:$4 sm:$0xff]   ;;  %v3500_v60 = vld [vmem:[%s4979_s1 + $0x38c] ss:$16 sps:$4 sm:$0xff]  }
  0x48   : > { %1383 = vmatprep.subr.bf16.mxu0 %v3384_v61  ;;  %1769 = vmatprep.subr.bf16.mxu1 %v3386_v62  ;;  %v3503_v61 = vld [vmem:[%s4979_s1 + $0x360] ss:$16 sps:$4 sm:$0xff]  }
  0x49   : > { %v3443_v62 = vld [vmem:[%s4147_s13 + $0xc0] ss:$16 sps:$4 sm:$0xff]  }
  0x4b   : > { %1384 = vmatpush1.bf16.msra.mxu0 %v3388_v63  ;;  %1770 = vmatpush1.bf16.msra.mxu1 %v3389_v0  ;;  %v3447_v63 = vld [vmem:[%s4147_s13 + $0xe4] ss:$16 sps:$4 sm:$0xff]   ;;  %v3498_v0 = vld [vmem:[%s4979_s1 + $0x388] ss:$16 sps:$4 sm:$0xff]  }
  0x4c   : > { %1932 = vmatprep.subr.bf16.mxu1 %v3395_v1  ;;  %1546 = vmatprep.subr.bf16.mxu0 %v3406_v2  ;;  %v3514_v1 = vld [vmem:[%s4979_s1 + $0x384] ss:$16 sps:$4 sm:$0xff]   ;;  %v3509_v2 = vld [vmem:[%s4979_s1 + $0x3ac] ss:$16 sps:$4 sm:$0xff]  }
  0x4e   : > { %1386 = vmatmul.mubr.bf16.vlgmr.msra.gmra.mrb[0].mxu0 %v3390_v3  ;;  %1772 = vmatmul.mubr.bf16.vlgmr.msra.gmra.mrb[0].mxu1 %v3390_v3  ;;  %v3512_v3 = vld [vmem:[%s4979_s1 + $0x380] ss:$16 sps:$4 sm:$0xff]  }
  0x4f   : > { %1933 = vmatpush1.bf16.msra.mxu1 %v3393_v4  ;;  %1395 = vmatprep.mubr.bf16.mxu0 %v3396_v5  ;;  %v3507_v4 = vld [vmem:[%s4979_s1 + $0x3a8] ss:$16 sps:$4 sm:$0xff]  }
  0x50   : > { %1781 = vmatprep.mubr.bf16.mxu1 %v3396_v5  ;;  %1934 = vmatprep.subr.bf16.mxu1 %v3401_v6  ;;  %v3521_v5 = vld [vmem:[%s4979_s1 + $0x3a4] ss:$16 sps:$4 sm:$0xff]   ;;  %v3518_v6 = vld [vmem:[%s4979_s1 + $0x3cc] ss:$16 sps:$4 sm:$0xff]  }
  0x51   : > { %1547 = vmatpush1.bf16.msra.mxu0 %v3404_v7  ;;  %v3452_v7 = vld [vmem:[%s4147_s13 + $0xe0] ss:$16 sps:$4 sm:$0xff]  }
  0x52   : > { %1548 = vmatprep.subr.bf16.mxu0 %v3415_v8  ;;  %v3519_v8 = vld [vmem:[%s4979_s1 + $0x3a0] ss:$16 sps:$4 sm:$0xff]  }
  0x53   : > { %1935 = vmatpush1.bf16.msra.mxu1 %v3399_v9  ;;  %v3456_v9 = vld [vmem:[%s4147_s13 + $0x104] ss:$16 sps:$4 sm:$0xff]  }
  0x54   : > { %1936 = vmatprep.subr.bf16.mxu1 %v3410_v10  ;;  %v3516_v10 = vld [vmem:[%s4979_s1 + $0x3c8] ss:$16 sps:$4 sm:$0xff]  }
  0x55   : > { %1549 = vmatpush1.bf16.msra.mxu0 %v3413_v11  ;;  %v3527_v11 = vld [vmem:[%s4979_s1 + $0x3c4] ss:$16 sps:$4 sm:$0xff]  }
  0x56   : > { %1396 = vmatmul.mubr.bf16.gmra.mrb[4].mxu0 %v3398_v12  ;;  %1782 = vmatmul.mubr.bf16.gmra.mrb[4].mxu1 %v3398_v12  ;;  %v3525_v12 = vld [vmem:[%s4979_s1 + $0x3c0] ss:$16 sps:$4 sm:$0xff]  }
  0x57   : > { %1405 = vmatprep.mubr.bf16.mxu0 %v3402_v13  ;;  %1791 = vmatprep.mubr.bf16.mxu1 %v3402_v13  ;;  %v3530_v13 = vld [vmem:[%s4979_s1 + $0x3ec] ss:$16 sps:$4 sm:$0xff]  }
  0x58   : > { %1937 = vmatpush1.bf16.msra.mxu1 %v3408_v14  ;;  %1550 = vmatprep.subr.bf16.mxu0 %v3424_v15  ;;  %v3533_v14 = vld [vmem:[%s4979_s1 + $0x3e4] ss:$16 sps:$4 sm:$0xff]   ;;  %v3528_v15 = vld [vmem:[%s4979_s1 + $0x3e8] ss:$16 sps:$4 sm:$0xff]  }
  0x59   : > { %1938 = vmatprep.subr.bf16.mxu1 %v3419_v16  ;;  %1551 = vmatpush1.bf16.msra.mxu0 %v3422_v17  ;;  %v3531_v16 = vld [vmem:[%s4979_s1 + $0x3e0] ss:$16 sps:$4 sm:$0xff]  }
  0x5a   : > { %1552 = vmatprep.subr.bf16.mxu0 %v3433_v18  ;;  %v3461_v17 = vld [vmem:[%s4147_s13 + $0x100] ss:$16 sps:$4 sm:$0xff]   ;;  %v3465_v18 = vld [vmem:[%s4147_s13 + $0x124] ss:$16 sps:$4 sm:$0xff]  }
  0x5c   : > { %1939 = vmatpush1.bf16.msra.mxu1 %v3417_v19  ;;  %v3470_v19 = vld [vmem:[%s4147_s13 + $0x120] ss:$16 sps:$4 sm:$0xff]  }
  0x5d   : > { %1940 = vmatprep.subr.bf16.mxu1 %v3428_v20  ;;  %1553 = vmatpush1.bf16.msra.mxu0 %v3431_v21  ;;  %v3474_v20 = vld [vmem:[%s4147_s13 + $0x144] ss:$16 sps:$4 sm:$0xff]   ;;  %v3479_v21 = vld [vmem:[%s4147_s13 + $0x140] ss:$16 sps:$4 sm:$0xff]  }
  0x5e   : > { %1406 = vmatmul.mubr.bf16.gmra.mrb[8].mxu0 %v3407_v22  ;;  %1792 = vmatmul.mubr.bf16.gmra.mrb[8].mxu1 %v3407_v22  ;;  %v3483_v22 = vld [vmem:[%s4147_s13 + $0x164] ss:$16 sps:$4 sm:$0xff]  }
  0x5f   : > { %1415 = vmatprep.mubr.bf16.mxu0 %v3411_v23  ;;  %1801 = vmatprep.mubr.bf16.mxu1 %v3411_v23  ;;  %v3488_v23 = vld [vmem:[%s4147_s13 + $0x160] ss:$16 sps:$4 sm:$0xff]  }
  0x60   : > { %1941 = vmatpush1.bf16.msra.mxu1 %v3426_v24  ;;  %1554 = vmatprep.subr.bf16.mxu0 %v3442_v25  ;;  %v3492_v24 = vld [vmem:[%s4147_s13 + $0x184] ss:$16 sps:$4 sm:$0xff]   ;;  %v3497_v25 = vld [vmem:[%s4147_s13 + $0x180] ss:$16 sps:$4 sm:$0xff]  }
  0x61   : > { %1942 = vmatprep.subr.bf16.mxu1 %v3437_v26  ;;  %1555 = vmatpush1.bf16.msra.mxu0 %v3440_v27  ;;  %v3501_v26 = vld [vmem:[%s4147_s13 + $0x1a4] ss:$16 sps:$4 sm:$0xff]   ;;  %v3506_v27 = vld [vmem:[%s4147_s13 + $0x1a0] ss:$16 sps:$4 sm:$0xff]  }
  0x62   : > { %1556 = vmatprep.subr.bf16.mxu0 %v3451_v28  ;;  %v3510_v28 = vld [vmem:[%s4147_s13 + $0x1c4] ss:$16 sps:$4 sm:$0xff]  }
  0x64   : > { %1943 = vmatpush1.bf16.msra.mxu1 %v3435_v29  ;;  %v3515_v29 = vld [vmem:[%s4147_s13 + $0x1c0] ss:$16 sps:$4 sm:$0xff]  }
  0x65   : > { %1944 = vmatprep.subr.bf16.mxu1 %v3446_v30  ;;  %1557 = vmatpush1.bf16.msra.mxu0 %v3449_v31  ;;  %v3522_v30 = vld [vmem:[%s4147_s13 + $0x1e4] ss:$16 sps:$4 sm:$0xff]   ;;  %v3524_v31 = vld [vmem:[%s4147_s13 + $0x1e0] ss:$16 sps:$4 sm:$0xff]  }
  0x66   : > { %1416 = vmatmul.mubr.bf16.gmra.mrb[12].mxu0 %v3416_v32  ;;  %1802 = vmatmul.mubr.bf16.gmra.mrb[12].mxu1 %v3416_v32  ;;  %v3536_v32 = vld [vmem:[%s4147_s13 + $0xc] ss:$16 sps:$4 sm:$0xff]  }
  0x67   : > { %1425 = vmatprep.mubr.bf16.mxu0 %v3420_v33  ;;  %1811 = vmatprep.mubr.bf16.mxu1 %v3420_v33  ;;  %v3534_v33 = vld [vmem:[%s4147_s13 + $0x8] ss:$16 sps:$4 sm:$0xff]  }
  0x68   : > { %1945 = vmatpush1.bf16.msra.mxu1 %v3444_v34  ;;  %1558 = vmatprep.subr.bf16.mxu0 %v3460_v35  ;;  %v3537_v34 = vld [vmem:[%s4147_s13 + $0x2c] ss:$16 sps:$4 sm:$0xff]   ;;  %v3539_v35 = vld [vmem:[%s4147_s13 + $0x28] ss:$16 sps:$4 sm:$0xff]  }
  0x69   : > { %1946 = vmatprep.subr.bf16.mxu1 %v3455_v36  ;;  %1559 = vmatpush1.bf16.msra.mxu0 %v3458_v37  ;;  %v3540_v36 = vld [vmem:[%s4147_s13 + $0x4c] ss:$16 sps:$4 sm:$0xff]   ;;  %v3542_v37 = vld [vmem:[%s4147_s13 + $0x48] ss:$16 sps:$4 sm:$0xff]  }
  0x6a   : > { %1560 = vmatprep.subr.bf16.mxu0 %v3469_v38  ;;  %v3543_v38 = vld [vmem:[%s4147_s13 + $0x6c] ss:$16 sps:$4 sm:$0xff]  }
  0x6c   : > { %1947 = vmatpush1.bf16.msra.mxu1 %v3453_v39  ;;  %v3545_v39 = vld [vmem:[%s4147_s13 + $0x68] ss:$16 sps:$4 sm:$0xff]  }
  0x6d   : > { %1948 = vmatprep.subr.bf16.mxu1 %v3464_v40  ;;  %1561 = vmatpush1.bf16.msra.mxu0 %v3467_v41  ;;  %v3546_v40 = vld [vmem:[%s4147_s13 + $0x8c] ss:$16 sps:$4 sm:$0xff]   ;;  %v3548_v41 = vld [vmem:[%s4147_s13 + $0x88] ss:$16 sps:$4 sm:$0xff]  }
  0x6e   : > { %1426 = vmatmul.mubr.bf16.gmra.mrb[16].mxu0 %v3425_v42  ;;  %1812 = vmatmul.mubr.bf16.gmra.mrb[16].mxu1 %v3425_v42  ;;  %v3549_v42 = vld [vmem:[%s4147_s13 + $0xac] ss:$16 sps:$4 sm:$0xff]  }
  0x6f   : > { %1435 = vmatprep.mubr.bf16.mxu0 %v3429_v43  ;;  %1821 = vmatprep.mubr.bf16.mxu1 %v3429_v43  ;;  %v3551_v43 = vld [vmem:[%s4147_s13 + $0xa8] ss:$16 sps:$4 sm:$0xff]  }
  0x70   : > { %1949 = vmatpush1.bf16.msra.mxu1 %v3462_v44  ;;  %1562 = vmatprep.subr.bf16.mxu0 %v3478_v45  ;;  %v3552_v44 = vld [vmem:[%s4147_s13 + $0xcc] ss:$16 sps:$4 sm:$0xff]   ;;  %v3554_v45 = vld [vmem:[%s4147_s13 + $0xc8] ss:$16 sps:$4 sm:$0xff]  }
  0x71   : > { %1950 = vmatprep.subr.bf16.mxu1 %v3473_v46  ;;  %1563 = vmatpush1.bf16.msra.mxu0 %v3476_v47  ;;  %v3555_v46 = vld [vmem:[%s4147_s13 + $0xec] ss:$16 sps:$4 sm:$0xff]   ;;  %v3557_v47 = vld [vmem:[%s4147_s13 + $0xe8] ss:$16 sps:$4 sm:$0xff]  }
  0x72   : > { %1564 = vmatprep.subr.bf16.mxu0 %v3487_v48  ;;  %v3558_v48 = vld [vmem:[%s4147_s13 + $0x10c] ss:$16 sps:$4 sm:$0xff]  }
  0x74   : > { %1951 = vmatpush1.bf16.msra.mxu1 %v3471_v49  ;;  %v3560_v49 = vld [vmem:[%s4147_s13 + $0x108] ss:$16 sps:$4 sm:$0xff]  }
  0x75   : > { %1952 = vmatprep.subr.bf16.mxu1 %v3482_v50  ;;  %1565 = vmatpush1.bf16.msra.mxu0 %v3485_v51  ;;  %v3561_v50 = vld [vmem:[%s4147_s13 + $0x12c] ss:$16 sps:$4 sm:$0xff]   ;;  %v3563_v51 = vld [vmem:[%s4147_s13 + $0x128] ss:$16 sps:$4 sm:$0xff]  }
  0x76   : > { %1436 = vmatmul.mubr.bf16.gmra.mrb[20].mxu0 %v3434_v52  ;;  %1822 = vmatmul.mubr.bf16.gmra.mrb[20].mxu1 %v3434_v52  ;;  %v3564_v52 = vld [vmem:[%s4147_s13 + $0x14c] ss:$16 sps:$4 sm:$0xff]  }
  0x77   : > { %1445 = vmatprep.mubr.bf16.mxu0 %v3438_v53  ;;  %1831 = vmatprep.mubr.bf16.mxu1 %v3438_v53  ;;  %v3566_v53 = vld [vmem:[%s4147_s13 + $0x148] ss:$16 sps:$4 sm:$0xff]  }
  0x78   : > { %1953 = vmatpush1.bf16.msra.mxu1 %v3480_v54  ;;  %1566 = vmatprep.subr.bf16.mxu0 %v3496_v55  ;;  %v3567_v54 = vld [vmem:[%s4147_s13 + $0x16c] ss:$16 sps:$4 sm:$0xff]   ;;  %v3569_v55 = vld [vmem:[%s4147_s13 + $0x168] ss:$16 sps:$4 sm:$0xff]  }
  0x79   : > { %1954 = vmatprep.subr.bf16.mxu1 %v3491_v56  ;;  %1567 = vmatpush1.bf16.msra.mxu0 %v3494_v57  ;;  %v3570_v56 = vld [vmem:[%s4147_s13 + $0x18c] ss:$16 sps:$4 sm:$0xff]   ;;  %v3572_v57 = vld [vmem:[%s4147_s13 + $0x188] ss:$16 sps:$4 sm:$0xff]  }
  0x7a   : > { %1568 = vmatprep.subr.bf16.mxu0 %v3505_v58  ;;  %v3573_v58 = vld [vmem:[%s4147_s13 + $0x1ac] ss:$16 sps:$4 sm:$0xff]  }
  0x7c   : > { %1955 = vmatpush1.bf16.msra.mxu1 %v3489_v59  ;;  %v3575_v59 = vld [vmem:[%s4147_s13 + $0x1a8] ss:$16 sps:$4 sm:$0xff]  }
  0x7d   : > { %1956 = vmatprep.subr.bf16.mxu1 %v3500_v60  ;;  %1569 = vmatpush1.bf16.msra.mxu0 %v3503_v61  ;;  %v3576_v60 = vld [vmem:[%s4147_s13 + $0x1cc] ss:$16 sps:$4 sm:$0xff]   ;;  %v3578_v61 = vld [vmem:[%s4147_s13 + $0x1c8] ss:$16 sps:$4 sm:$0xff]  }
  0x7e   : > { %1446 = vmatmul.mubr.bf16.gmra.mrb[24].mxu0 %v3443_v62  ;;  %1832 = vmatmul.mubr.bf16.gmra.mrb[24].mxu1 %v3443_v62  ;;  %v3579_v62 = vld [vmem:[%s4147_s13 + $0x1ec] ss:$16 sps:$4 sm:$0xff]  }
  0x7f   : > { %1455 = vmatprep.mubr.bf16.mxu0 %v3447_v63  ;;  %1841 = vmatprep.mubr.bf16.mxu1 %v3447_v63  ;;  %v3581_v63 = vld [vmem:[%s4147_s13 + $0x1e8] ss:$16 sps:$4 sm:$0xff]  }
  0x80   : > { %1957 = vmatpush1.bf16.msra.mxu1 %v3498_v0  ;;  %1570 = vmatprep.subr.bf16.mxu0 %v3514_v1  ;;  %v373_v0 = vlaneseq }
  0x81   : > { %1958 = vmatprep.subr.bf16.mxu1 %v3509_v2  ;;  %1571 = vmatpush1.bf16.msra.mxu0 %v3512_v3  ;;  %v371_v3 = vld [vmem:[%s4980_s2] sm:$0xf] }
  0x82   : > { %1572 = vmatprep.subr.bf16.mxu0 %v3521_v5  ;;  %v374_v1 = vshrl.u32 %v373_v0, 7 }
  0x84   : > { %1959 = vmatpush1.bf16.msra.mxu1 %v3507_v4  ;;  %v383_v2 = vsub.s32 2, %v374_v1  ;;  %v387_v4 = vsub.s32 3, %v374_v1  ;;  %v375_v5 = vsub.s32 0, %v374_v1 }
  0x85   : > { %1960 = vmatprep.subr.bf16.mxu1 %v3518_v6  ;;  %1573 = vmatpush1.bf16.msra.mxu0 %v3519_v8  ;;  %v379_v8 = vsub.s32 1, %v374_v1 }
  0x86   : > { %1456 = vmatmul.mubr.bf16.gmra.mrb[28].mxu0 %v3452_v7  ;;  %1842 = vmatmul.mubr.bf16.gmra.mrb[28].mxu1 %v3452_v7  ;;  %v4465_v6 = vrot.slane %v371_v3, %v383_v2  ;;  %v4467_v7 = vrot.slane %v371_v3, %v387_v4 }
  0x87   : > { %1465 = vmatprep.mubr.bf16.mxu0 %v3456_v9  ;;  %1851 = vmatprep.mubr.bf16.mxu1 %v3456_v9 }
  0x88   : > { %1961 = vmatpush1.bf16.msra.mxu1 %v3516_v10  ;;  %1574 = vmatprep.subr.bf16.mxu0 %v3527_v11  ;;  %v4469_v11 = vrot.slane %v371_v3, %v375_v5 }
  0x89   : > { %1962 = vmatprep.subr.bf16.mxu1 %v3530_v13  ;;  %1575 = vmatpush1.bf16.msra.mxu0 %v3525_v12 }
  0x8a   : > { %1576 = vmatprep.subr.bf16.mxu0 %v3533_v14 }
  0x8c   : > { %1963 = vmatpush1.bf16.msra.mxu1 %v3528_v15 }
  0x8d   : > { %1577 = vmatpush1.bf16.msra.mxu0 %v3531_v16 }
  0x8e   : > { %1466 = vmatmul.mubr.bf16.gmra.mrb[32].mxu0 %v3461_v17  ;;  %1852 = vmatmul.mubr.bf16.gmra.mrb[32].mxu1 %v3461_v17 }
  0x8f   : > { %1475 = vmatprep.mubr.bf16.mxu0 %v3465_v18  ;;  %1861 = vmatprep.mubr.bf16.mxu1 %v3465_v18 }
  0x96   : > { %1476 = vmatmul.mubr.bf16.gmra.mrb[36].mxu0 %v3470_v19  ;;  %1862 = vmatmul.mubr.bf16.gmra.mrb[36].mxu1 %v3470_v19  ;;  %v4473_v19 = vrot.slane %v371_v3, %v379_v8 }
  0x97   : > { %1485 = vmatprep.mubr.bf16.mxu0 %v3474_v20  ;;  %1871 = vmatprep.mubr.bf16.mxu1 %v3474_v20 }
  0x9e   : > { %1486 = vmatmul.mubr.bf16.gmra.mrb[40].mxu0 %v3479_v21  ;;  %1872 = vmatmul.mubr.bf16.gmra.mrb[40].mxu1 %v3479_v21 }
  0x9f   : > { %1495 = vmatprep.mubr.bf16.mxu0 %v3483_v22  ;;  %1881 = vmatprep.mubr.bf16.mxu1 %v3483_v22 }
  0xa6   : > { %1496 = vmatmul.mubr.bf16.gmra.mrb[44].mxu0 %v3488_v23  ;;  %1882 = vmatmul.mubr.bf16.gmra.mrb[44].mxu1 %v3488_v23 }
  0xa7   : > { %1505 = vmatprep.mubr.bf16.mxu0 %v3492_v24  ;;  %1891 = vmatprep.mubr.bf16.mxu1 %v3492_v24 }
  0xae   : > { %1506 = vmatmul.mubr.bf16.gmra.mrb[48].mxu0 %v3497_v25  ;;  %1892 = vmatmul.mubr.bf16.gmra.mrb[48].mxu1 %v3497_v25 }
  0xaf   : > { %1515 = vmatprep.mubr.bf16.mxu0 %v3501_v26  ;;  %1901 = vmatprep.mubr.bf16.mxu1 %v3501_v26 }
  0xb6   : > { %1516 = vmatmul.mubr.bf16.gmra.mrb[52].mxu0 %v3506_v27  ;;  %1902 = vmatmul.mubr.bf16.gmra.mrb[52].mxu1 %v3506_v27 }
  0xb7   : > { %1525 = vmatprep.mubr.bf16.mxu0 %v3510_v28  ;;  %1911 = vmatprep.mubr.bf16.mxu1 %v3510_v28 }
  0xbe   : > { %1526 = vmatmul.mubr.bf16.gmra.mrb[56].mxu0 %v3515_v29  ;;  %1912 = vmatmul.mubr.bf16.gmra.mrb[56].mxu1 %v3515_v29 }
  0xbf   : > { %1535 = vmatprep.mubr.bf16.mxu0 %v3522_v30  ;;  %1921 = vmatprep.mubr.bf16.mxu1 %v3522_v30 }
  0xc6   : > { %1536 = vmatmul.mubr.bf16.gmra.mrb[60].mxu0 %v3524_v31  ;;  %1922 = vmatmul.mubr.bf16.gmra.mrb[60].mxu1 %v3524_v31 }
  0xc7   : > { %1578 = vmatprep.mubr.bf16.mxu0 %v3536_v32  ;;  %1964 = vmatprep.mubr.bf16.mxu1 %v3536_v32 }
  0xce   : > { %1579 = vmatmul.mubr.bf16.vlgmr.msra.gmra.mrb[0].mxu0 %v3534_v33  ;;  %1965 = vmatmul.mubr.bf16.vlgmr.msra.gmra.mrb[0].mxu1 %v3534_v33 }
  0xcf   : > { %1588 = vmatprep.mubr.bf16.mxu0 %v3537_v34  ;;  %1974 = vmatprep.mubr.bf16.mxu1 %v3537_v34 }
  0xd6   : > { %1589 = vmatmul.mubr.bf16.gmra.mrb[4].mxu0 %v3539_v35  ;;  %1975 = vmatmul.mubr.bf16.gmra.mrb[4].mxu1 %v3539_v35 }
  0xd7   : > { %1598 = vmatprep.mubr.bf16.mxu0 %v3540_v36  ;;  %1984 = vmatprep.mubr.bf16.mxu1 %v3540_v36 }
  0xde   : > { %1599 = vmatmul.mubr.bf16.gmra.mrb[8].mxu0 %v3542_v37  ;;  %1985 = vmatmul.mubr.bf16.gmra.mrb[8].mxu1 %v3542_v37 }
  0xdf   : > { %1608 = vmatprep.mubr.bf16.mxu0 %v3543_v38  ;;  %1994 = vmatprep.mubr.bf16.mxu1 %v3543_v38 }
  0xe6   : > { %1609 = vmatmul.mubr.bf16.gmra.mrb[12].mxu0 %v3545_v39  ;;  %1995 = vmatmul.mubr.bf16.gmra.mrb[12].mxu1 %v3545_v39 }
  0xe7   : > { %1618 = vmatprep.mubr.bf16.mxu0 %v3546_v40  ;;  %2004 = vmatprep.mubr.bf16.mxu1 %v3546_v40 }
  0xee   : > { %1619 = vmatmul.mubr.bf16.gmra.mrb[16].mxu0 %v3548_v41  ;;  %2005 = vmatmul.mubr.bf16.gmra.mrb[16].mxu1 %v3548_v41 }
  0xef   : > { %1628 = vmatprep.mubr.bf16.mxu0 %v3549_v42  ;;  %2014 = vmatprep.mubr.bf16.mxu1 %v3549_v42 }
  0xf6   : > { %1629 = vmatmul.mubr.bf16.gmra.mrb[20].mxu0 %v3551_v43  ;;  %2015 = vmatmul.mubr.bf16.gmra.mrb[20].mxu1 %v3551_v43 }
  0xf7   : > { %1638 = vmatprep.mubr.bf16.mxu0 %v3552_v44  ;;  %2024 = vmatprep.mubr.bf16.mxu1 %v3552_v44 }
  0xfe   : > { %1639 = vmatmul.mubr.bf16.gmra.mrb[24].mxu0 %v3554_v45  ;;  %2025 = vmatmul.mubr.bf16.gmra.mrb[24].mxu1 %v3554_v45 }
  0xff   : > { %1648 = vmatprep.mubr.bf16.mxu0 %v3555_v46  ;;  %2034 = vmatprep.mubr.bf16.mxu1 %v3555_v46 }
 0x106   : > { %1649 = vmatmul.mubr.bf16.gmra.mrb[28].mxu0 %v3557_v47  ;;  %2035 = vmatmul.mubr.bf16.gmra.mrb[28].mxu1 %v3557_v47 }
 0x107   : > { %1658 = vmatprep.mubr.bf16.mxu0 %v3558_v48  ;;  %2044 = vmatprep.mubr.bf16.mxu1 %v3558_v48 }
 0x10e   : > { %1659 = vmatmul.mubr.bf16.gmra.mrb[32].mxu0 %v3560_v49  ;;  %2045 = vmatmul.mubr.bf16.gmra.mrb[32].mxu1 %v3560_v49 }
 0x10f   : > { %1668 = vmatprep.mubr.bf16.mxu0 %v3561_v50  ;;  %2054 = vmatprep.mubr.bf16.mxu1 %v3561_v50 }
 0x116   : > { %1669 = vmatmul.mubr.bf16.gmra.mrb[36].mxu0 %v3563_v51  ;;  %2055 = vmatmul.mubr.bf16.gmra.mrb[36].mxu1 %v3563_v51 }
 0x117   : > { %1678 = vmatprep.mubr.bf16.mxu0 %v3564_v52  ;;  %2064 = vmatprep.mubr.bf16.mxu1 %v3564_v52 }
 0x11e   : > { %1679 = vmatmul.mubr.bf16.gmra.mrb[40].mxu0 %v3566_v53  ;;  %2065 = vmatmul.mubr.bf16.gmra.mrb[40].mxu1 %v3566_v53 }
 0x11f   : > { %1688 = vmatprep.mubr.bf16.mxu0 %v3567_v54  ;;  %2074 = vmatprep.mubr.bf16.mxu1 %v3567_v54 }
 0x126   : > { %1689 = vmatmul.mubr.bf16.gmra.mrb[44].mxu0 %v3569_v55  ;;  %2075 = vmatmul.mubr.bf16.gmra.mrb[44].mxu1 %v3569_v55 }
 0x127   : > { %1698 = vmatprep.mubr.bf16.mxu0 %v3570_v56  ;;  %2084 = vmatprep.mubr.bf16.mxu1 %v3570_v56 }
 0x12e   : > { %1699 = vmatmul.mubr.bf16.gmra.mrb[48].mxu0 %v3572_v57  ;;  %2085 = vmatmul.mubr.bf16.gmra.mrb[48].mxu1 %v3572_v57 }
 0x12f   : > { %1708 = vmatprep.mubr.bf16.mxu0 %v3573_v58  ;;  %2094 = vmatprep.mubr.bf16.mxu1 %v3573_v58 }
 0x136   : > { %1709 = vmatmul.mubr.bf16.gmra.mrb[52].mxu0 %v3575_v59  ;;  %2095 = vmatmul.mubr.bf16.gmra.mrb[52].mxu1 %v3575_v59 }
 0x137   : > { %1718 = vmatprep.mubr.bf16.mxu0 %v3576_v60  ;;  %2104 = vmatprep.mubr.bf16.mxu1 %v3576_v60 }
 0x13e   : > { %1719 = vmatmul.mubr.bf16.gmra.mrb[56].mxu0 %v3578_v61  ;;  %2105 = vmatmul.mubr.bf16.gmra.mrb[56].mxu1 %v3578_v61 }
 0x13f   : > { %1728 = vmatprep.mubr.bf16.mxu0 %v3579_v62  ;;  %2114 = vmatprep.mubr.bf16.mxu1 %v3579_v62 }
 0x146   : > { %1729 = vmatmul.mubr.bf16.gmra.mrb[60].mxu0 %v3581_v63  ;;  %2115 = vmatmul.mubr.bf16.gmra.mrb[60].mxu1 %v3581_v63 }
 0x1a1   : > { %v1580_v9 = vpop.f32.mrb[0].mxu0  ;;  %v1966_v10 = vpop.f32.mrb[0].mxu1 }
 0x1a2   : > { %v3094_v12 = vadd.f32 %v1966_v10, %v4465_v6  ;;  %v1582_v13 = vpop.f32.mrb[1].mxu0  ;;  %v1968_v14 = vpop.f32.mrb[1].mxu1  ;;  %v3030_v25 = vadd.f32 %v1580_v9, %v4469_v11 }
 0x1a3   : > { %v3095_v15 = vadd.f32 %v1968_v14, %v4467_v7  ;;  %v1584_v16 = vpop.f32.mrb[2].mxu0  ;;  %v1970_v17 = vpop.f32.mrb[2].mxu1  ;;  %v3031_v28 = vadd.f32 %v1582_v13, %v4473_v19 }
 0x1a4   : > { %v2962_v18 = vmul.f32 -1.442695, %v3094_v12  ;;  %v3096_v20 = vadd.f32 %v1970_v17, %v4465_v6  ;;  %v1586_v21 = vpop.f32.mrb[3].mxu0  ;;  %v1972_v22 = vpop.f32.mrb[3].mxu1  ;;  %v3032_v29 = vadd.f32 %v1584_v16, %v4469_v11 }
 0x1a5   : > { %v2963_v23 = vmul.f32 -1.442695, %v3095_v15  ;;  %v3097_v24 = vadd.f32 %v1972_v22, %v4467_v7  ;;  %v3033_v38 = vadd.f32 %v1586_v21, %v4473_v19 }
 0x1a6   : > { %3582 = vpow2.f32 %v2962_v18  ;;  %v2964_v26 = vmul.f32 -1.442695, %v3096_v20 }
 0x1a7   : > { %3584 = vpow2.f32 %v2963_v23  ;;  %v2965_v27 = vmul.f32 -1.442695, %v3097_v24 }
 0x1a8   : > { %3586 = vpow2.f32 %v2964_v26 }
 0x1a9   : > { %v1590_v30 = vpop.f32.mrb[4].mxu0  ;;  %v1976_v31 = vpop.f32.mrb[4].mxu1  ;;  %3588 = vtanh.f32 %v3030_v25 }
 0x1aa   : > { %v3098_v32 = vadd.f32 %v1976_v31, %v4465_v6  ;;  %v1592_v33 = vpop.f32.mrb[5].mxu0  ;;  %v1978_v34 = vpop.f32.mrb[5].mxu1  ;;  %3590 = vpow2.f32 %v2965_v27  ;;  %v3034_v45 = vadd.f32 %v1590_v30, %v4469_v11 }
 0x1ab   : > { %v3099_v35 = vadd.f32 %v1978_v34, %v4467_v7  ;;  %v1594_v36 = vpop.f32.mrb[6].mxu0  ;;  %v1980_v37 = vpop.f32.mrb[6].mxu1  ;;  %3592 = vtanh.f32 %v3031_v28  ;;  %v3035_v58 = vadd.f32 %v1592_v33, %v4473_v19 }
 0x1ac   : > { %v2966_v39 = vmul.f32 -1.442695, %v3098_v32  ;;  %v3100_v40 = vadd.f32 %v1980_v37, %v4465_v6  ;;  %v4484_v41 = vpop.f32.mrb[7].mxu0  ;;  %v1982_v42 = vpop.f32.mrb[7].mxu1  ;;  %3594 = vtanh.f32 %v3032_v29  ;;  %v3036_v8 = vadd.f32 %v1594_v36, %v4469_v11 }
 0x1ad   : > { %v2967_v43 = vmul.f32 -1.442695, %v3099_v35  ;;  %v3101_v44 = vadd.f32 %v1982_v42, %v4467_v7  ;;  %v3037_v33 = vadd.f32 %v4484_v41, %v4473_v19 }
 0x1ae   : > { %3596 = vpow2.f32 %v2966_v39  ;;  %v2968_v46 = vmul.f32 -1.442695, %v3100_v40 }
 0x1af   : > { %3598 = vpow2.f32 %v2967_v43  ;;  %v2969_v50 = vmul.f32 -1.442695, %v3101_v44 }
 0x1b0   : > { %v3583_v47 = vpop.eup %3582  ;;  %3600 = vtanh.f32 %v3033_v38 }
 0x1b1   : > { %v3585_v48 = vpop.eup %3584  ;;  %v2381_v49 = vadd.f32 1.0, %v3583_v47  ;;  %3602 = vpow2.f32 %v2968_v46  ;;  %v4488_v51 = vpop.f32.mrb[8].mxu0 }
 0x1b2   : > { %v1986_v52 = vpop.f32.mrb[8].mxu1  ;;  %v2382_v53 = vadd.f32 1.0, %v3585_v48  ;;  %3604 = vtanh.f32 %v3034_v45  ;;  %v4491_v55 = vpop.f32.mrb[9].mxu0  ;;  %v3038_v43 = vadd.f32 %v4488_v51, %v4469_v11 }
 0x1b3   : > { %v3102_v54 = vadd.f32 %v1986_v52, %v4465_v6  ;;  %v1988_v56 = vpop.f32.mrb[9].mxu1  ;;  %v3587_v57 = vpop.eup %3586  ;;  %3606 = vrcp.f32 %v2381_v49 }
 0x1b4   : > { %v4494_v59 = vpop.f32.mrb[10].mxu0  ;;  %v1990_v60 = vpop.f32.mrb[10].mxu1  ;;  %3608 = vrcp.f32 %v2382_v53  ;;  %v2383_v62 = vadd.f32 1.0, %v3587_v57  ;;  %v3103_v3 = vadd.f32 %v1988_v56, %v4467_v7 }
 0x1b5   : > { %v3589_v61 = vpop.eup %3588  ;;  %v4496_v63 = vpop.f32.mrb[11].mxu0  ;;  %3610 = vpow2.f32 %v2969_v50  ;;  %v2970_v2 = vmul.f32 -1.442695, %v3102_v54  ;;  %v3104_v12 = vadd.f32 %v1990_v60, %v4465_v6  ;;  %v3039_v54 = vadd.f32 %v4491_v55, %v4473_v19 }
 0x1b6   : > { %v1992_v0 = vpop.f32.mrb[11].mxu1  ;;  %v3591_v1 = vpop.eup %3590  ;;  %3612 = vrcp.f32 %v2383_v62  ;;  %v2971_v15 = vmul.f32 -1.442695, %v3103_v3  ;;  %v3040_v55 = vadd.f32 %v4494_v59, %v4469_v11 }
 0x1b7   : > { %v3593_v4 = vpop.eup %3592  ;;  %v2384_v5 = vadd.f32 1.0, %v3591_v1  ;;  %3614 = vtanh.f32 %v3035_v58  ;;  %v3105_v24 = vadd.f32 %v1992_v0, %v4467_v7  ;;  %v2972_v29 = vmul.f32 -1.442695, %v3104_v12 }
 0x1b8   : > { %v3595_v9 = vpop.eup %3594 }
 0x1b9   : > { %v3597_v10 = vpop.eup %3596  ;;  %3616 = vrcp.f32 %v2384_v5  ;;  %v4501_v16 = vpop.f32.mrb[12].mxu0  ;;  %v2973_v39 = vmul.f32 -1.442695, %v3105_v24 }
 0x1ba   : > { %v3599_v13 = vpop.eup %3598  ;;  %v2385_v14 = vadd.f32 1.0, %v3597_v10  ;;  %3618 = vpow2.f32 %v2970_v2  ;;  %v1996_v17 = vpop.f32.mrb[12].mxu1 }
 0x1bb   : > { %v3601_v18 = vpop.eup %3600  ;;  %v2386_v20 = vadd.f32 1.0, %v3599_v13  ;;  %3620 = vtanh.f32 %v3036_v8  ;;  %v4503_v21 = vpop.f32.mrb[13].mxu0  ;;  %v3106_v34 = vadd.f32 %v1996_v17, %v4465_v6 }
 0x1bc   : > { %v1998_v22 = vpop.f32.mrb[13].mxu1  ;;  %v3603_v23 = vpop.eup %3602  ;;  %3622 = vrcp.f32 %v2385_v14  ;;  %v3041_v14 = vadd.f32 %v4496_v63, %v4473_v19  ;;  %v3042_v63 = vadd.f32 %v4501_v16, %v4469_v11 }
 0x1bd   : > { %v4506_v25 = vpop.f32.mrb[14].mxu0  ;;  %v2000_v26 = vpop.f32.mrb[14].mxu1  ;;  %3624 = vrcp.f32 %v2386_v20  ;;  %v2387_v28 = vadd.f32 1.0, %v3603_v23  ;;  %v3107_v41 = vadd.f32 %v1998_v22, %v4467_v7  ;;  %v2974_v46 = vmul.f32 -1.442695, %v3106_v34 }
 0x1be   : > { %v3605_v27 = vpop.eup %3604  ;;  %v4508_v30 = vpop.f32.mrb[15].mxu0  ;;  %3626 = vpow2.f32 %v2971_v15  ;;  %v3108_v56 = vadd.f32 %v2000_v26, %v4465_v6 }
 0x1bf   : > { %v2002_v31 = vpop.f32.mrb[15].mxu1  ;;  %v3607_v32 = vpop.eup %3606  ;;  %3628 = vrcp.f32 %v2387_v28  ;;  %v2975_v62 = vmul.f32 -1.442695, %v3107_v41 }
 0x1c0   : > { %v3609_v35 = vpop.eup %3608  ;;  %v2573_v36 = vmul.f32 %v3607_v32, %v3589_v61  ;;  %3630 = vpow2.f32 %v2972_v29  ;;  %v3109_v5 = vadd.f32 %v2002_v31, %v4467_v7  ;;  %v2976_v10 = vmul.f32 -1.442695, %v3108_v56 }
 0x1c1   : > { %v3611_v37 = vpop.eup %3610  ;;  %v2574_v38 = vmul.f32 %v3609_v35, %v3593_v4  ;;  %3632 = vtanh.f32 %v3037_v33  ;;  %v4525_v47 = vpop.f32.mrb[16].mxu0 }
 0x1c2   : > { %v3613_v40 = vpop.eup %3612  ;;  %2637 = vst [vmem:[%s4515_s16] sm:$0xff] %v2573_v36  ;;  %v2388_v42 = vadd.f32 1.0, %v3611_v37  ;;  %v2006_v48 = vpop.f32.mrb[16].mxu1  ;;  %v2977_v22 = vmul.f32 -1.442695, %v3109_v5 }
 0x1c3   : > { %v3615_v44 = vpop.eup %3614  ;;  %2638 = vst [vmem:[%s4515_s16 + $0x8] sm:$0xff] %v2574_v38  ;;  %v2575_v45 = vmul.f32 %v3613_v40, %v3595_v9  ;;  %v4527_v50 = vpop.f32.mrb[17].mxu0  ;;  %v3110_v15 = vadd.f32 %v2006_v48, %v4465_v6  ;;  %v3043_v40 = vadd.f32 %v4503_v21, %v4473_v19 }
 0x1c4   : > { %v3617_v49 = vpop.eup %3616  ;;  %3634 = vrcp.f32 %v2388_v42  ;;  %v2008_v52 = vpop.f32.mrb[17].mxu1 }
 0x1c5   : > { %v3619_v53 = vpop.eup %3618  ;;  %2639 = vst [vmem:[%s4515_s16 + $0x10] sm:$0xff] %v2575_v45  ;;  %v2576_v51 = vmul.f32 %v3617_v49, %v3601_v18  ;;  %3636 = vpow2.f32 %v2973_v39  ;;  %v4533_v57 = vpop.f32.mrb[18].mxu0  ;;  %v3111_v32 = vadd.f32 %v2008_v52, %v4467_v7  ;;  %v2978_v37 = vmul.f32 -1.442695, %v3110_v15 }
 0x1c6   : > { %v2010_v58 = vpop.f32.mrb[18].mxu1  ;;  %v3621_v60 = vpop.eup %3620  ;;  %3638 = vtanh.f32 %v3038_v43  ;;  %v2389_v61 = vadd.f32 1.0, %v3619_v53  ;;  %v3044_v53 = vadd.f32 %v4506_v25, %v4469_v11 }
 0x1c7   : > { %v4535_v0 = vpop.f32.mrb[19].mxu0  ;;  %v4537_v1 = vpop.f32.mrb[19].mxu1  ;;  %2640 = vst [vmem:[%s4515_s16 + $0x18] sm:$0xff] %v2576_v51  ;;  %3640 = vpow2.f32 %v2974_v46  ;;  %v3112_v42 = vadd.f32 %v2010_v58, %v4465_v6 }
 0x1c8   : > { %v3623_v2 = vpop.eup %3622  ;;  %3642 = vrcp.f32 %v2389_v61  ;;  %v3113_v21 = vadd.f32 %v4537_v1, %v4467_v7 }
 0x1c9   : > { %v3625_v3 = vpop.eup %3624  ;;  %v2577_v4 = vmul.f32 %v3623_v2, %v3605_v27  ;;  %3644 = vtanh.f32 %v3039_v54  ;;  %v4548_v17 = vpop.f32.mrb[20].mxu0 }
 0x1ca   : > { %v3627_v8 = vpop.eup %3626  ;;  %v2578_v9 = vmul.f32 %v3625_v3, %v3615_v44  ;;  %3646 = vpow2.f32 %v2975_v62  ;;  %v2016_v18 = vpop.f32.mrb[20].mxu1  ;;  %v2979_v44 = vmul.f32 -1.442695, %v3111_v32 }
 0x1cb   : > { %v3629_v12 = vpop.eup %3628  ;;  %2641 = vst [vmem:[%s4515_s16 + $0x20] sm:$0xff] %v2577_v4  ;;  %v2390_v13 = vadd.f32 1.0, %v3627_v8  ;;  %3648 = vtanh.f32 %v3040_v55  ;;  %v4550_v23 = vpop.f32.mrb[21].mxu0  ;;  %v3045_v4 = vadd.f32 %v4508_v30, %v4473_v19  ;;  %v3114_v5 = vadd.f32 %v2016_v18, %v4465_v6 }
 0x1cc   : > { %2642 = vst [vmem:[%s4515_s16 + $0x28] sm:$0xff] %v2578_v9  ;;  %v2579_v59 = vmul.f32 %v3629_v12, %v3621_v60  ;;  %v3631_v20 = vpop.eup %3630  ;;  %v4552_v24 = vpop.f32.mrb[21].mxu1  ;;  %v2980_v60 = vmul.f32 -1.442695, %v3112_v42 }
 0x1cd   : > { %3650 = vrcp.f32 %v2390_v13  ;;  %v3633_v26 = vpop.eup %3632  ;;  %v2391_v27 = vadd.f32 1.0, %v3631_v20  ;;  %v4557_v28 = vpop.f32.mrb[22].mxu0  ;;  %v3115_v15 = vadd.f32 %v4552_v24, %v4467_v7  ;;  %v2982_v20 = vmul.f32 -1.442695, %v3114_v5 }
 0x1ce   : > { %2643 = vst [vmem:[%s4515_s16 + $0x30] sm:$0xff] %v2579_v59  ;;  %3652 = vpow2.f32 %v2976_v10  ;;  %v4559_v29 = vpop.f32.mrb[22].mxu1  ;;  %v3635_v31 = vpop.eup %3634  ;;  %v2981_v10 = vmul.f32 -1.442695, %v3113_v21  ;;  %v3046_v59 = vadd.f32 %v4525_v47, %v4469_v11  ;;  %v3047_v24 = vadd.f32 %v4527_v50, %v4473_v19 }
 0x1cf   : > { %3654 = vtanh.f32 %v3041_v14  ;;  %v4562_v33 = vpop.f32.mrb[23].mxu0  ;;  %v4564_v34 = vpop.f32.mrb[23].mxu1  ;;  %v2580_v36 = vmul.f32 %v3635_v31, %v3633_v26 }
 0x1d0   : > { %v3637_v35 = vpop.eup %3636  ;;  %3656 = vrcp.f32 %v2391_v27 }
 0x1d1   : > { %v3639_v38 = vpop.eup %3638  ;;  %v2392_v16 = vadd.f32 1.0, %v3637_v35  ;;  %3658 = vpow2.f32 %v2977_v22  ;;  %2644 = vst [vmem:[%s4515_s16 + $0x38] sm:$0xff] %v2580_v36  ;;  %v4570_v48 = vpop.f32.mrb[24].mxu0  ;;  %v3116_v35 = vadd.f32 %v4559_v29, %v4465_v6  ;;  %v3048_v29 = vadd.f32 %v4533_v57, %v4469_v11 }
 0x1d2   : > { %v3641_v39 = vpop.eup %3640  ;;  %3660 = vtanh.f32 %v3042_v63  ;;  %v4572_v49 = vpop.f32.mrb[24].mxu1 }
 0x1d3   : > { %v3643_v43 = vpop.eup %3642  ;;  %3662 = vrcp.f32 %v2392_v16  ;;  %v2393_v41 = vadd.f32 1.0, %v3641_v39  ;;  %v4578_v51 = vpop.f32.mrb[25].mxu0  ;;  %v2983_v39 = vmul.f32 -1.442695, %v3115_v15  ;;  %v3118_v57 = vadd.f32 %v4572_v49, %v4465_v6 }
 0x1d4   : > { %v3645_v45 = vpop.eup %3644  ;;  %v2581_v46 = vmul.f32 %v3643_v43, %v3639_v38  ;;  %3664 = vpow2.f32 %v2978_v37  ;;  %v4580_v54 = vpop.f32.mrb[25].mxu1 }
 0x1d5   : > { %v3647_v52 = vpop.eup %3646  ;;  %3666 = vrcp.f32 %v2393_v41  ;;  %v4583_v61 = vpop.f32.mrb[26].mxu0 }
 0x1d6   : > { %v3649_v56 = vpop.eup %3648  ;;  %2645 = vst [vmem:[%s4515_s16 + $0x40] sm:$0xff] %v2581_v46  ;;  %3668 = vtanh.f32 %v3043_v40  ;;  %v2394_v58 = vadd.f32 1.0, %v3647_v52  ;;  %v4585_v62 = vpop.f32.mrb[26].mxu1  ;;  %v2984_v52 = vmul.f32 -1.442695, %v3116_v35 }
 0x1d7   : > { %v3651_v2 = vpop.eup %3650  ;;  %3670 = vpow2.f32 %v2979_v44  ;;  %v4587_v25 = vpop.f32.mrb[27].mxu0  ;;  %v3117_v44 = vadd.f32 %v4564_v34, %v4467_v7 }
 0x1d8   : > { %v4589_v55 = vpop.f32.mrb[27].mxu1  ;;  %v3653_v1 = vpop.eup %3652  ;;  %v2582_v3 = vmul.f32 %v3651_v2, %v3645_v45  ;;  %3672 = vrcp.f32 %v2394_v58  ;;  %v3049_v58 = vadd.f32 %v4535_v0, %v4473_v19 }
 0x1d9   : > { %v3655_v8 = vpop.eup %3654  ;;  %3674 = vtanh.f32 %v3044_v53  ;;  %v2395_v9 = vadd.f32 1.0, %v3653_v1  ;;  %v4599_v22 = vpop.f32.mrb[28].mxu0 }
 0x1da   : > { %v3657_v12 = vpop.eup %3656  ;;  %2646 = vst [vmem:[%s4515_s16 + $0x48] sm:$0xff] %v2582_v3  ;;  %3676 = vpow2.f32 %v2980_v60  ;;  %v4601_v26 = vpop.f32.mrb[28].mxu1  ;;  %v2985_v3 = vmul.f32 -1.442695, %v3117_v44 }
 0x1db   : > { %v3659_v13 = vpop.eup %3658  ;;  %v2583_v14 = vmul.f32 %v3657_v12, %v3649_v56  ;;  %3678 = vrcp.f32 %v2395_v9  ;;  %v4604_v63 = vpop.f32.mrb[29].mxu0  ;;  %v3050_v12 = vadd.f32 %v4548_v17, %v4469_v11  ;;  %v3051_v17 = vadd.f32 %v4550_v23, %v4473_v19 }
 0x1dc   : > { %v3661_v30 = vpop.eup %3660  ;;  %3680 = vtanh.f32 %v3045_v4  ;;  %v2396_v18 = vadd.f32 1.0, %v3659_v13  ;;  %v4606_v31 = vpop.f32.mrb[29].mxu1  ;;  %v3119_v13 = vadd.f32 %v4580_v54, %v4467_v7  ;;  %v3120_v54 = vadd.f32 %v4585_v62, %v4465_v6 }
 0x1dd   : > { %v3663_v27 = vpop.eup %3662  ;;  %2647 = vst [vmem:[%s4515_s16 + $0x50] sm:$0xff] %v2583_v14  ;;  %3682 = vpow2.f32 %v2981_v10  ;;  %v4612_v36 = vpop.f32.mrb[30].mxu0  ;;  %v3052_v23 = vadd.f32 %v4557_v28, %v4469_v11  ;;  %v3121_v62 = vadd.f32 %v4589_v55, %v4467_v7 }
 0x1de   : > { %v3665_v47 = vpop.eup %3664  ;;  %v2584_v32 = vmul.f32 %v3663_v27, %v3655_v8  ;;  %3684 = vrcp.f32 %v2396_v18  ;;  %v4614_v37 = vpop.f32.mrb[30].mxu1  ;;  %v2986_v18 = vmul.f32 -1.442695, %v3118_v57  ;;  %v2987_v35 = vmul.f32 -1.442695, %v3119_v13 }
 0x1df   : > { %v3667_v38 = vpop.eup %3666  ;;  %3686 = vtanh.f32 %v3046_v59  ;;  %v2397_v16 = vadd.f32 1.0, %v3665_v47  ;;  %v4616_v40 = vpop.f32.mrb[31].mxu0  ;;  %v3053_v57 = vadd.f32 %v4562_v33, %v4473_v19  ;;  %v3054_v13 = vadd.f32 %v4570_v48, %v4469_v11 }
 0x1e0   : > { %v4618_v42 = vpop.f32.mrb[31].mxu1  ;;  %v3669_v43 = vpop.eup %3668  ;;  %2648 = vst [vmem:[%s4515_s16 + $0x58] sm:$0xff] %v2584_v32  ;;  %v2585_v41 = vmul.f32 %v3667_v38, %v3661_v30  ;;  %3688 = vpow2.f32 %v2982_v20 }
 0x1e1   : > { %v3671_v50 = vpop.eup %3670  ;;  %3690 = vrcp.f32 %v2397_v16  ;;  %v4630_v60 = vpop.f32.mrb[32].mxu0 }
 0x1e2   : > { %v3673_v45 = vpop.eup %3672  ;;  %2649 = vst [vmem:[%s4515_s16 + $0x60] sm:$0xff] %v2585_v41  ;;  %3692 = vtanh.f32 %v3047_v24  ;;  %v2398_v46 = vadd.f32 1.0, %v3671_v50  ;;  %v4632_v34 = vpop.f32.mrb[32].mxu1 }
 0x1e3   : > { %v3675_v53 = vpop.eup %3674  ;;  %v2586_v21 = vmul.f32 %v3673_v45, %v3669_v43  ;;  %3694 = vpow2.f32 %v2983_v39  ;;  %v4635_v4 = vpop.f32.mrb[33].mxu0 }
 0x1e4   : > { %v3677_v56 = vpop.eup %3676  ;;  %3696 = vrcp.f32 %v2398_v46  ;;  %v4637_v5 = vpop.f32.mrb[33].mxu1  ;;  %v2988_v46 = vmul.f32 -1.442695, %v3120_v54 }
 0x1e5   : > { %v3679_v2 = vpop.eup %3678  ;;  %2650 = vst [vmem:[%s4515_s16 + $0x68] sm:$0xff] %v2586_v21  ;;  %3698 = vtanh.f32 %v3048_v29  ;;  %v2399_v1 = vadd.f32 1.0, %v3677_v56  ;;  %v4639_v0 = vpop.f32.mrb[34].mxu0 }
 0x1e6   : > { %v3681_v8 = vpop.eup %3680  ;;  %v2587_v9 = vmul.f32 %v3679_v2, %v3675_v53  ;;  %3700 = vpow2.f32 %v2984_v52  ;;  %v4641_v49 = vpop.f32.mrb[34].mxu1  ;;  %v3122_v2 = vadd.f32 %v4601_v26, %v4465_v6 }
 0x1e7   : > { %v3683_v10 = vpop.eup %3682  ;;  %3702 = vrcp.f32 %v2399_v1  ;;  %v4647_v14 = vpop.f32.mrb[35].mxu0 }
 0x1e8   : > { %v4649_v59 = vpop.f32.mrb[35].mxu1  ;;  %v3685_v15 = vpop.eup %3684  ;;  %2651 = vst [vmem:[%s4515_s16 + $0x70] sm:$0xff] %v2587_v9  ;;  %3704 = vtanh.f32 %v3049_v58  ;;  %v2400_v30 = vadd.f32 1.0, %v3683_v10 }
 0x1e9   : > { %v3687_v20 = vpop.eup %3686  ;;  %v2588_v27 = vmul.f32 %v3685_v15, %v3681_v8  ;;  %3706 = vpow2.f32 %v2985_v3  ;;  %v4657_v39 = vpop.f32.mrb[36].mxu0  ;;  %v2989_v8 = vmul.f32 -1.442695, %v3121_v62  ;;  %v3123_v15 = vadd.f32 %v4606_v31, %v4467_v7 }
 0x1ea   : > { %v3689_v47 = vpop.eup %3688  ;;  %3708 = vrcp.f32 %v2400_v30  ;;  %v4659_v43 = vpop.f32.mrb[36].mxu1  ;;  %v2990_v30 = vmul.f32 -1.442695, %v3122_v2  ;;  %v3055_v31 = vadd.f32 %v4578_v51, %v4473_v19 }
 0x1eb   : > { %v3691_v32 = vpop.eup %3690  ;;  %2652 = vst [vmem:[%s4515_s16 + $0x78] sm:$0xff] %v2588_v27  ;;  %3710 = vtanh.f32 %v3050_v12  ;;  %v2401_v24 = vadd.f32 1.0, %v3689_v47  ;;  %v4665_v50 = vpop.f32.mrb[37].mxu0 }
 0x1ec   : > { %v3693_v38 = vpop.eup %3692  ;;  %v2589_v16 = vmul.f32 %v3691_v32, %v3687_v20  ;;  %3712 = vpow2.f32 %v2986_v18  ;;  %v4667_v29 = vpop.f32.mrb[37].mxu1  ;;  %v3124_v32 = vadd.f32 %v4614_v37, %v4465_v6  ;;  %v3056_v37 = vadd.f32 %v4583_v61, %v4469_v11 }
 0x1ed   : > { %v3695_v41 = vpop.eup %3694  ;;  %3714 = vrcp.f32 %v2401_v24  ;;  %v4670_v52 = vpop.f32.mrb[38].mxu0  ;;  %v3126_v61 = vadd.f32 %v4632_v34, %v4465_v6 }
 0x1ee   : > { %v3697_v44 = vpop.eup %3696  ;;  %2653 = vst [vmem:[%s4515_s16 + $0x80] sm:$0xff] %v2589_v16  ;;  %3716 = vtanh.f32 %v3051_v17  ;;  %v2402_v45 = vadd.f32 1.0, %v3695_v41  ;;  %v4672_v53 = vpop.f32.mrb[38].mxu1  ;;  %v2991_v41 = vmul.f32 -1.442695, %v3123_v15 }
 0x1ef   : > { %v3699_v21 = vpop.eup %3698  ;;  %v2590_v56 = vmul.f32 %v3697_v44, %v3693_v38  ;;  %3718 = vpow2.f32 %v2987_v35  ;;  %v4674_v28 = vpop.f32.mrb[39].mxu0 }
 0x1f0   : > { %v4676_v55 = vpop.f32.mrb[39].mxu1  ;;  %v3701_v58 = vpop.eup %3700  ;;  %3720 = vrcp.f32 %v2402_v45 }
 0x1f1   : > { %v3703_v1 = vpop.eup %3702  ;;  %2654 = vst [vmem:[%s4515_s16 + $0x88] sm:$0xff] %v2590_v56  ;;  %3722 = vtanh.f32 %v3052_v23  ;;  %v2403_v3 = vadd.f32 1.0, %v3701_v58  ;;  %v4688_v18 = vpop.f32.mrb[40].mxu0  ;;  %v2992_v58 = vmul.f32 -1.442695, %v3124_v32 }
 0x1f2   : > { %v3705_v9 = vpop.eup %3704  ;;  %v2591_v10 = vmul.f32 %v3703_v1, %v3699_v21  ;;  %3724 = vpow2.f32 %v2988_v46  ;;  %v4690_v20 = vpop.f32.mrb[40].mxu1  ;;  %v3125_v46 = vadd.f32 %v4618_v42, %v4467_v7 }
 0x1f3   : > { %v3707_v12 = vpop.eup %3706  ;;  %3726 = vrcp.f32 %v2403_v3  ;;  %v4692_v17 = vpop.f32.mrb[41].mxu0  ;;  %v3057_v3 = vadd.f32 %v4587_v25, %v4473_v19 }
 0x1f4   : > { %v3709_v33 = vpop.eup %3708  ;;  %2655 = vst [vmem:[%s4515_s16 + $0x90] sm:$0xff] %v2591_v10  ;;  %3728 = vtanh.f32 %v3053_v57  ;;  %v2404_v26 = vadd.f32 1.0, %v3707_v12  ;;  %v4694_v54 = vpop.f32.mrb[41].mxu1  ;;  %v2993_v12 = vmul.f32 -1.442695, %v3125_v46 }
 0x1f5   : > { %v3711_v27 = vpop.eup %3710  ;;  %v2592_v47 = vmul.f32 %v3709_v33, %v3705_v9  ;;  %3730 = vpow2.f32 %v2989_v8  ;;  %v4700_v24 = vpop.f32.mrb[42].mxu0 }
 0x1f6   : > { %v3713_v48 = vpop.eup %3712  ;;  %3732 = vrcp.f32 %v2404_v26  ;;  %v4702_v35 = vpop.f32.mrb[42].mxu1 }
 0x1f7   : > { %v3715_v38 = vpop.eup %3714  ;;  %2656 = vst [vmem:[%s4515_s16 + $0x98] sm:$0xff] %v2592_v47  ;;  %3734 = vtanh.f32 %v3054_v13  ;;  %v2405_v16 = vadd.f32 1.0, %v3713_v48  ;;  %v4705_v23 = vpop.f32.mrb[43].mxu0  ;;  %v3127_v47 = vadd.f32 %v4637_v5, %v4467_v7  ;;  %v3128_v5 = vadd.f32 %v4641_v49, %v4465_v6 }
 0x1f8   : > { %v4707_v62 = vpop.f32.mrb[43].mxu1  ;;  %v3717_v44 = vpop.eup %3716  ;;  %v2593_v45 = vmul.f32 %v3715_v38, %v3711_v27  ;;  %3736 = vpow2.f32 %v2990_v30  ;;  %v3058_v27 = vadd.f32 %v4599_v22, %v4469_v11  ;;  %v3059_v22 = vadd.f32 %v4604_v63, %v4473_v19 }
 0x1f9   : > { %v3719_v51 = vpop.eup %3718  ;;  %3738 = vrcp.f32 %v2405_v16  ;;  %v4718_v8 = vpop.f32.mrb[44].mxu0  ;;  %v2994_v16 = vmul.f32 -1.442695, %v3126_v61  ;;  %v2995_v46 = vmul.f32 -1.442695, %v3127_v47  ;;  %v3060_v63 = vadd.f32 %v4612_v36, %v4469_v11 }
 0x1fa   : > { %v3721_v21 = vpop.eup %3720  ;;  %2657 = vst [vmem:[%s4515_s16 + $0xa0] sm:$0xff] %v2593_v45  ;;  %3740 = vtanh.f32 %v3055_v31  ;;  %v2406_v56 = vadd.f32 1.0, %v3719_v51  ;;  %v4720_v42 = vpop.f32.mrb[44].mxu1  ;;  %v3129_v49 = vadd.f32 %v4649_v59, %v4467_v7  ;;  %v3061_v47 = vadd.f32 %v4616_v40, %v4473_v19 }
 0x1fb   : > { %v3723_v57 = vpop.eup %3722  ;;  %v2594_v2 = vmul.f32 %v3721_v21, %v3717_v44  ;;  %3742 = vpow2.f32 %v2991_v41  ;;  %v4723_v13 = vpop.f32.mrb[45].mxu0 }
 0x1fc   : > { %v3725_v1 = vpop.eup %3724  ;;  %3744 = vrcp.f32 %v2406_v56  ;;  %v4725_v15 = vpop.f32.mrb[45].mxu1 }
 0x1fd   : > { %v3727_v9 = vpop.eup %3726  ;;  %2658 = vst [vmem:[%s4515_s16 + $0xa8] sm:$0xff] %v2594_v2  ;;  %3746 = vtanh.f32 %v3056_v37  ;;  %v2407_v10 = vadd.f32 1.0, %v3725_v1  ;;  %v4727_v25 = vpop.f32.mrb[46].mxu0 }
 0x1fe   : > { %v3729_v33 = vpop.eup %3728  ;;  %v2595_v26 = vmul.f32 %v3727_v9, %v3723_v57  ;;  %3748 = vpow2.f32 %v2992_v58  ;;  %v4729_v34 = vpop.f32.mrb[46].mxu1 }
 0x1ff   : > { %v3731_v30 = vpop.eup %3730  ;;  %3750 = vrcp.f32 %v2407_v10  ;;  %v4735_v48 = vpop.f32.mrb[47].mxu0  ;;  %v2996_v10 = vmul.f32 -1.442695, %v3128_v5  ;;  %v3062_v5 = vadd.f32 %v4630_v60, %v4469_v11 }
 0x200   : > { %v4737_v31 = vpop.f32.mrb[47].mxu1  ;;  %v3733_v32 = vpop.eup %3732  ;;  %2659 = vst [vmem:[%s4515_s16 + $0xb0] sm:$0xff] %v2595_v26  ;;  %3752 = vtanh.f32 %v3057_v3  ;;  %v2408_v38 = vadd.f32 1.0, %v3731_v30 }
 0x201   : > { %v3735_v41 = vpop.eup %3734  ;;  %v2596_v44 = vmul.f32 %v3733_v32, %v3729_v33  ;;  %3754 = vpow2.f32 %v2993_v12  ;;  %v4745_v58 = vpop.f32.mrb[48].mxu0  ;;  %v3130_v32 = vadd.f32 %v4659_v43, %v4465_v6 }
 0x202   : > { %v3737_v45 = vpop.eup %3736  ;;  %3756 = vrcp.f32 %v2408_v38  ;;  %v4747_v57 = vpop.f32.mrb[48].mxu1 }
 0x203   : > { %v3739_v51 = vpop.eup %3738  ;;  %2660 = vst [vmem:[%s4515_s16 + $0xb8] sm:$0xff] %v2596_v44  ;;  %3758 = vtanh.f32 %v3058_v27  ;;  %v2409_v37 = vadd.f32 1.0, %v3737_v45  ;;  %v4753_v1 = vpop.f32.mrb[49].mxu0 }
 0x204   : > { %v3741_v21 = vpop.eup %3740  ;;  %v2597_v56 = vmul.f32 %v3739_v51, %v3735_v41  ;;  %3760 = vpow2.f32 %v2994_v16  ;;  %v4755_v3 = vpop.f32.mrb[49].mxu1  ;;  %v2997_v41 = vmul.f32 -1.442695, %v3129_v49  ;;  %v3131_v51 = vadd.f32 %v4667_v29, %v4467_v7 }
 0x205   : > { %v3743_v2 = vpop.eup %3742  ;;  %3762 = vrcp.f32 %v2409_v37  ;;  %v4758_v12 = vpop.f32.mrb[50].mxu0  ;;  %v2998_v37 = vmul.f32 -1.442695, %v3130_v32  ;;  %v3063_v29 = vadd.f32 %v4635_v4, %v4473_v19 }
 0x206   : > { %v3745_v61 = vpop.eup %3744  ;;  %2661 = vst [vmem:[%s4515_s16 + $0xc0] sm:$0xff] %v2597_v56  ;;  %3764 = vtanh.f32 %v3059_v22  ;;  %v2410_v9 = vadd.f32 1.0, %v3743_v2  ;;  %v4760_v33 = vpop.f32.mrb[50].mxu1 }
 0x207   : > { %v3747_v26 = vpop.eup %3746  ;;  %v2598_v30 = vmul.f32 %v3745_v61, %v3741_v21  ;;  %3766 = vpow2.f32 %v2995_v46  ;;  %v4762_v36 = vpop.f32.mrb[51].mxu0  ;;  %v3132_v61 = vadd.f32 %v4672_v53, %v4465_v6  ;;  %v3064_v53 = vadd.f32 %v4639_v0, %v4469_v11 }
 0x208   : > { %v4764_v59 = vpop.f32.mrb[51].mxu1  ;;  %v3749_v27 = vpop.eup %3748  ;;  %3768 = vrcp.f32 %v2410_v9  ;;  %v3134_v0 = vadd.f32 %v4690_v20, %v4465_v6 }
 0x209   : > { %v3751_v38 = vpop.eup %3750  ;;  %2662 = vst [vmem:[%s4515_s16 + $0xc8] sm:$0xff] %v2598_v30  ;;  %3770 = vtanh.f32 %v3060_v63  ;;  %v2411_v16 = vadd.f32 1.0, %v3749_v27  ;;  %v4776_v46 = vpop.f32.mrb[52].mxu0  ;;  %v2999_v27 = vmul.f32 -1.442695, %v3131_v51 }
 0x20a   : > { %v3753_v44 = vpop.eup %3752  ;;  %v2599_v45 = vmul.f32 %v3751_v38, %v3747_v26  ;;  %3772 = vpow2.f32 %v2996_v10  ;;  %v4778_v21 = vpop.f32.mrb[52].mxu1 }
 0x20b   : > { %v3755_v22 = vpop.eup %3754  ;;  %3774 = vrcp.f32 %v2411_v16  ;;  %v4780_v63 = vpop.f32.mrb[53].mxu0 }
 0x20c   : > { %v3757_v40 = vpop.eup %3756  ;;  %2663 = vst [vmem:[%s4515_s16 + $0xd0] sm:$0xff] %v2599_v45  ;;  %3776 = vtanh.f32 %v3061_v47  ;;  %v2412_v43 = vadd.f32 1.0, %v3755_v22  ;;  %v4782_v49 = vpop.f32.mrb[53].mxu1  ;;  %v3000_v22 = vmul.f32 -1.442695, %v3132_v61 }
 0x20d   : > { %v3759_v56 = vpop.eup %3758  ;;  %v2600_v2 = vmul.f32 %v3757_v40, %v3753_v44  ;;  %3778 = vpow2.f32 %v2997_v41  ;;  %v4788_v9 = vpop.f32.mrb[54].mxu0  ;;  %v3133_v41 = vadd.f32 %v4676_v55, %v4467_v7 }
 0x20e   : > { %v3761_v60 = vpop.eup %3760  ;;  %3780 = vrcp.f32 %v2412_v43  ;;  %v4790_v10 = vpop.f32.mrb[54].mxu1  ;;  %v3065_v43 = vadd.f32 %v4647_v14, %v4473_v19 }
 0x20f   : > { %v3763_v26 = vpop.eup %3762  ;;  %2664 = vst [vmem:[%s4515_s16 + $0xd8] sm:$0xff] %v2600_v2  ;;  %3782 = vtanh.f32 %v3062_v5  ;;  %v2413_v30 = vadd.f32 1.0, %v3761_v60  ;;  %v4793_v47 = vpop.f32.mrb[55].mxu0  ;;  %v3001_v60 = vmul.f32 -1.442695, %v3133_v41 }
 0x210   : > { %v4795_v32 = vpop.f32.mrb[55].mxu1  ;;  %v3765_v38 = vpop.eup %3764  ;;  %v2601_v16 = vmul.f32 %v3763_v26, %v3759_v56  ;;  %3784 = vpow2.f32 %v2998_v37 }
 0x211   : > { %v3767_v4 = vpop.eup %3766  ;;  %3786 = vrcp.f32 %v2413_v30  ;;  %v4806_v37 = vpop.f32.mrb[56].mxu0 }
 0x212   : > { %v3769_v44 = vpop.eup %3768  ;;  %2665 = vst [vmem:[%s4515_s16 + $0xe0] sm:$0xff] %v2601_v16  ;;  %3788 = vtanh.f32 %v3063_v29  ;;  %v2414_v45 = vadd.f32 1.0, %v3767_v4  ;;  %v4808_v55 = vpop.f32.mrb[56].mxu1  ;;  %v3135_v16 = vadd.f32 %v4694_v54, %v4467_v7  ;;  %v3136_v54 = vadd.f32 %v4702_v35, %v4465_v6 }
 0x213   : > { %v3771_v5 = vpop.eup %3770  ;;  %v2602_v51 = vmul.f32 %v3769_v44, %v3765_v38  ;;  %3790 = vpow2.f32 %v2999_v27  ;;  %v4811_v29 = vpop.f32.mrb[57].mxu0  ;;  %v3066_v38 = vadd.f32 %v4657_v39, %v4469_v11  ;;  %v3067_v39 = vadd.f32 %v4665_v50, %v4473_v19 }
 0x214   : > { %v3773_v40 = vpop.eup %3772  ;;  %3792 = vrcp.f32 %v2414_v45  ;;  %v4813_v61 = vpop.f32.mrb[57].mxu1  ;;  %v3002_v45 = vmul.f32 -1.442695, %v3134_v0  ;;  %v3068_v50 = vadd.f32 %v4670_v52, %v4469_v11  ;;  %v3137_v35 = vadd.f32 %v4707_v62, %v4467_v7 }
 0x215   : > { %v3775_v56 = vpop.eup %3774  ;;  %2666 = vst [vmem:[%s4515_s16 + $0xe8] sm:$0xff] %v2602_v51  ;;  %3794 = vtanh.f32 %v3064_v53  ;;  %v2415_v2 = vadd.f32 1.0, %v3773_v40  ;;  %v4815_v14 = vpop.f32.mrb[58].mxu0 }
 0x216   : > { %v3777_v26 = vpop.eup %3776  ;;  %v2603_v30 = vmul.f32 %v3775_v56, %v3771_v5  ;;  %3796 = vpow2.f32 %v3000_v22  ;;  %v4817_v20 = vpop.f32.mrb[58].mxu1 }
 0x217   : > { %v3779_v27 = vpop.eup %3778  ;;  %3798 = vrcp.f32 %v2415_v2  ;;  %v4823_v4 = vpop.f32.mrb[59].mxu0  ;;  %v3003_v2 = vmul.f32 -1.442695, %v3135_v16 }
 0x218   : > { %v4825_v53 = vpop.f32.mrb[59].mxu1  ;;  %v3781_v41 = vpop.eup %3780  ;;  %2667 = vst [vmem:[%s4515_s16 + $0xf0] sm:$0xff] %v2603_v30  ;;  %3800 = vtanh.f32 %v3065_v43  ;;  %v2416_v44 = vadd.f32 1.0, %v3779_v27 }
 0x219   : > { %v3783_v22 = vpop.eup %3782  ;;  %v2604_v5 = vmul.f32 %v3781_v41, %v3777_v26  ;;  %3802 = vpow2.f32 %v3001_v60  ;;  %v4833_v0 = vpop.f32.mrb[60].mxu0 }
 0x21a   : > { %v3785_v51 = vpop.eup %3784  ;;  %3804 = vrcp.f32 %v2416_v44  ;;  %v4835_v60 = vpop.f32.mrb[60].mxu1  ;;  %v3004_v44 = vmul.f32 -1.442695, %v3136_v54 }
 0x21b   : > { %v3787_v40 = vpop.eup %3786  ;;  %2668 = vst [vmem:[%s4515_s16 + $0xf8] sm:$0xff] %v2604_v5  ;;  %3806 = vtanh.f32 %v3066_v38  ;;  %v2417_v56 = vadd.f32 1.0, %v3785_v51  ;;  %v4841_v27 = vpop.f32.mrb[61].mxu0 }
 0x21c   : > { %v3789_v43 = vpop.eup %3788  ;;  %v2605_v30 = vmul.f32 %v3787_v40, %v3783_v22  ;;  %3808 = vpow2.f32 %v3002_v45  ;;  %v4843_v38 = vpop.f32.mrb[61].mxu1 }
 0x21d   : > { %v3791_v26 = vpop.eup %3790  ;;  %3810 = vrcp.f32 %v2417_v56  ;;  %v4846_v45 = vpop.f32.mrb[62].mxu0  ;;  %v3069_v56 = vadd.f32 %v4674_v28, %v4473_v19  ;;  %v3139_v28 = vadd.f32 %v4725_v15, %v4467_v7 }
 0x21e   : > { %v3793_v16 = vpop.eup %3792  ;;  %2669 = vst [vmem:[%s4515_s16 + $0x100] sm:$0xff] %v2605_v30  ;;  %3812 = vtanh.f32 %v3067_v39  ;;  %v2418_v41 = vadd.f32 1.0, %v3791_v26  ;;  %v4848_v22 = vpop.f32.mrb[62].mxu1  ;;  %v3138_v39 = vadd.f32 %v4720_v42, %v4465_v6  ;;  %v3005_v26 = vmul.f32 -1.442695, %v3137_v35 }
 0x21f   : > { %v3795_v5 = vpop.eup %3794  ;;  %v2606_v51 = vmul.f32 %v3793_v16, %v3789_v43  ;;  %3814 = vpow2.f32 %v3003_v2  ;;  %v4850_v52 = vpop.f32.mrb[63].mxu0 }
 0x220   : > { %4982 = vst [vmem:[#allocation2_spill] sm:$0xff] %v4850_v52  ;;  %v4852_v62 = vpop.f32.mrb[63].mxu1  ;;  %v3797_v40 = vpop.eup %3796  ;;  %3816 = vrcp.f32 %v2418_v41  ;;  %v3070_v41 = vadd.f32 %v4688_v18, %v4469_v11  ;;  %v3140_v18 = vadd.f32 %v4729_v34, %v4465_v6 }
 0x221   : > { %v3799_v54 = vpop.eup %3798  ;;  %2670 = vst [vmem:[%s4515_s16 + $0x108] sm:$0xff] %v2606_v51  ;;  %3818 = vtanh.f32 %v3068_v50  ;;  %v2419_v30 = vadd.f32 1.0, %v3797_v40  ;;  %v3006_v51 = vmul.f32 -1.442695, %v3138_v39 }
 0x222   : > { %v3801_v43 = vpop.eup %3800  ;;  %v2607_v2 = vmul.f32 %v3799_v54, %v3795_v5  ;;  %3820 = vpow2.f32 %v3004_v44  ;;  %v3071_v44 = vadd.f32 %v4692_v17, %v4473_v19  ;;  %v3007_v54 = vmul.f32 -1.442695, %v3139_v28 }
 0x223   : > { %v3803_v16 = vpop.eup %3802  ;;  %3822 = vrcp.f32 %v2419_v30  ;;  %v3141_v17 = vadd.f32 %v4737_v31, %v4467_v7  ;;  %v3073_v28 = vadd.f32 %v4705_v23, %v4473_v19  ;;  %v3143_v23 = vadd.f32 %v4755_v3, %v4467_v7 }
 0x224   : > { %v3805_v52 = vpop.eup %3804  ;;  %2671 = vst [vmem:[%s4515_s16 + $0x110] sm:$0xff] %v2607_v2  ;;  %3824 = vtanh.f32 %v3069_v56  ;;  %v2420_v42 = vadd.f32 1.0, %v3803_v16 }
 0x225   : > { %v3807_v50 = vpop.eup %3806  ;;  %v2608_v40 = vmul.f32 %v3805_v52, %v3801_v43  ;;  %3826 = vpow2.f32 %v3005_v26  ;;  %v3072_v52 = vadd.f32 %v4700_v24, %v4469_v11  ;;  %v3008_v43 = vmul.f32 -1.442695, %v3140_v18 }
 0x226   : > { %v3809_v35 = vpop.eup %3808  ;;  %3828 = vrcp.f32 %v2420_v42  ;;  %v3142_v24 = vadd.f32 %v4747_v57, %v4465_v6 }
 0x227   : > { %v3811_v5 = vpop.eup %3810  ;;  %2672 = vst [vmem:[%s4515_s16 + $0x118] sm:$0xff] %v2608_v40  ;;  %3830 = vtanh.f32 %v3070_v41  ;;  %v2421_v15 = vadd.f32 1.0, %v3809_v35 }
 0x228   : > { %v3813_v56 = vpop.eup %3812  ;;  %v2609_v30 = vmul.f32 %v3811_v5, %v3807_v50  ;;  %3832 = vpow2.f32 %v3006_v51  ;;  %v3009_v51 = vmul.f32 -1.442695, %v3141_v17  ;;  %v3010_v5 = vmul.f32 -1.442695, %v3142_v24 }
 0x229   : > { %v3815_v39 = vpop.eup %3814  ;;  %3834 = vrcp.f32 %v2421_v15 }
 0x22a   : > { %v3817_v26 = vpop.eup %3816  ;;  %2673 = vst [vmem:[%s4515_s16 + $0x120] sm:$0xff] %v2609_v30  ;;  %3836 = vtanh.f32 %v3071_v44  ;;  %v2422_v34 = vadd.f32 1.0, %v3815_v39  ;;  %v3074_v44 = vadd.f32 %v4718_v8, %v4469_v11  ;;  %v3075_v30 = vadd.f32 %v4723_v13, %v4473_v19 }
 0x22b   : > { %v3819_v2 = vpop.eup %3818  ;;  %v2610_v16 = vmul.f32 %v3817_v26, %v3813_v56  ;;  %3838 = vpow2.f32 %v3007_v54  ;;  %v3144_v8 = vadd.f32 %v4760_v33, %v4465_v6  ;;  %v3145_v13 = vadd.f32 %v4764_v59, %v4467_v7 }
 0x22c   : > { %v3821_v41 = vpop.eup %3820  ;;  %3840 = vrcp.f32 %v2422_v34 }
 0x22d   : > { %v3823_v42 = vpop.eup %3822  ;;  %2674 = vst [vmem:[%s4515_s16 + $0x128] sm:$0xff] %v2610_v16  ;;  %3842 = vtanh.f32 %v3072_v52  ;;  %v2423_v31 = vadd.f32 1.0, %v3821_v41  ;;  %v3011_v52 = vmul.f32 -1.442695, %v3143_v23  ;;  %v3012_v16 = vmul.f32 -1.442695, %v3144_v8 }
 0x22e   : > { %v3825_v50 = vpop.eup %3824  ;;  %v2611_v40 = vmul.f32 %v3823_v42, %v3819_v2  ;;  %3844 = vpow2.f32 %v3008_v43  ;;  %v3076_v43 = vadd.f32 %v4727_v25, %v4469_v11  ;;  %v3077_v42 = vadd.f32 %v4735_v48, %v4473_v19 }
 0x22f   : > { %v3827_v35 = vpop.eup %3826  ;;  %3846 = vrcp.f32 %v2423_v31  ;;  %v3146_v25 = vadd.f32 %v4778_v21, %v4465_v6  ;;  %v3147_v48 = vadd.f32 %v4782_v49, %v4467_v7 }
 0x230   : > { %v3829_v18 = vpop.eup %3828  ;;  %2675 = vst [vmem:[%s4515_s16 + $0x130] sm:$0xff] %v2611_v40  ;;  %3848 = vtanh.f32 %v3073_v28  ;;  %v2424_v57 = vadd.f32 1.0, %v3827_v35 }
 0x231   : > { %v3831_v15 = vpop.eup %3830  ;;  %v2612_v54 = vmul.f32 %v3829_v18, %v3825_v50  ;;  %3850 = vpow2.f32 %v3009_v51  ;;  %v3013_v51 = vmul.f32 -1.442695, %v3145_v13  ;;  %v3014_v18 = vmul.f32 -1.442695, %v3146_v25 }
 0x232   : > { %v3833_v56 = vpop.eup %3832  ;;  %3852 = vrcp.f32 %v2424_v57 }
 0x233   : > { %v3835_v39 = vpop.eup %3834  ;;  %2676 = vst [vmem:[%s4515_s16 + $0x138] sm:$0xff] %v2612_v54  ;;  %3854 = vtanh.f32 %v3074_v44  ;;  %v2425_v3 = vadd.f32 1.0, %v3833_v56  ;;  %v3078_v44 = vadd.f32 %v4745_v58, %v4469_v11  ;;  %v3079_v54 = vadd.f32 %v4753_v1, %v4473_v19 }
 0x234   : > { %v3837_v17 = vpop.eup %3836  ;;  %v2613_v26 = vmul.f32 %v3835_v39, %v3831_v15  ;;  %3856 = vpow2.f32 %v3010_v5  ;;  %v3148_v58 = vadd.f32 %v4790_v10, %v4465_v6  ;;  %v3149_v1 = vadd.f32 %v4795_v32, %v4467_v7 }
 0x235   : > { %v3839_v34 = vpop.eup %3838  ;;  %3858 = vrcp.f32 %v2425_v3 }
 0x236   : > { %v3841_v2 = vpop.eup %3840  ;;  %2677 = vst [vmem:[%s4515_s16 + $0x140] sm:$0xff] %v2613_v26  ;;  %3860 = vtanh.f32 %v3075_v30  ;;  %v2426_v33 = vadd.f32 1.0, %v3839_v34  ;;  %v3015_v30 = vmul.f32 -1.442695, %v3147_v48  ;;  %v3016_v26 = vmul.f32 -1.442695, %v3148_v58 }
 0x237   : > { %v3843_v41 = vpop.eup %3842  ;;  %v2614_v28 = vmul.f32 %v3841_v2, %v3837_v17  ;;  %3862 = vpow2.f32 %v3011_v52  ;;  %v3080_v52 = vadd.f32 %v4758_v12, %v4469_v11  ;;  %v3081_v2 = vadd.f32 %v4762_v36, %v4473_v19 }
 0x238   : > { %v3845_v24 = vpop.eup %3844  ;;  %3864 = vrcp.f32 %v2426_v33  ;;  %v3150_v12 = vadd.f32 %v4808_v55, %v4465_v6  ;;  %v3151_v36 = vadd.f32 %v4813_v61, %v4467_v7 }
 0x239   : > { %v3847_v31 = vpop.eup %3846  ;;  %2678 = vst [vmem:[%s4515_s16 + $0x148] sm:$0xff] %v2614_v28  ;;  %3866 = vtanh.f32 %v3076_v43  ;;  %v2427_v59 = vadd.f32 1.0, %v3845_v24 }
 0x23a   : > { %v3849_v50 = vpop.eup %3848  ;;  %v2615_v40 = vmul.f32 %v3847_v31, %v3843_v41  ;;  %3868 = vpow2.f32 %v3012_v16  ;;  %v3017_v16 = vmul.f32 -1.442695, %v3149_v1  ;;  %v3018_v31 = vmul.f32 -1.442695, %v3150_v12 }
 0x23b   : > { %v3851_v35 = vpop.eup %3850  ;;  %3870 = vrcp.f32 %v2427_v59 }
 0x23c   : > { %v3853_v23 = vpop.eup %3852  ;;  %2679 = vst [vmem:[%s4515_s16 + $0x150] sm:$0xff] %v2615_v40  ;;  %3872 = vtanh.f32 %v3077_v42  ;;  %v2428_v21 = vadd.f32 1.0, %v3851_v35  ;;  %v3082_v42 = vadd.f32 %v4776_v46, %v4469_v11  ;;  %v3083_v40 = vadd.f32 %v4780_v63, %v4473_v19 }
 0x23d   : > { %v3855_v57 = vpop.eup %3854  ;;  %v2616_v5 = vmul.f32 %v3853_v23, %v3849_v50  ;;  %3874 = vpow2.f32 %v3013_v51  ;;  %v3152_v46 = vadd.f32 %v4817_v20, %v4465_v6  ;;  %v3153_v63 = vadd.f32 %v4825_v53, %v4467_v7 }
 0x23e   : > { %v3857_v15 = vpop.eup %3856  ;;  %3876 = vrcp.f32 %v2428_v21 }
 0x23f   : > { %v3859_v56 = vpop.eup %3858  ;;  %2680 = vst [vmem:[%s4515_s16 + $0x158] sm:$0xff] %v2616_v5  ;;  %3878 = vtanh.f32 %v3078_v44  ;;  %v2429_v49 = vadd.f32 1.0, %v3857_v15  ;;  %v3019_v44 = vmul.f32 -1.442695, %v3151_v36  ;;  %v3020_v5 = vmul.f32 -1.442695, %v3152_v46 }
 0x240   : > { %v3861_v8 = vpop.eup %3860  ;;  %v2617_v39 = vmul.f32 %v3859_v56, %v3855_v57  ;;  %3880 = vpow2.f32 %v3014_v18  ;;  %v3084_v18 = vadd.f32 %v4788_v9, %v4469_v11  ;;  %v3085_v56 = vadd.f32 %v4793_v47, %v4473_v19 }
 0x241   : > { %v3863_v3 = vpop.eup %3862  ;;  %3882 = vrcp.f32 %v2429_v49  ;;  %v3154_v9 = vadd.f32 %v4835_v60, %v4465_v6  ;;  %v3155_v47 = vadd.f32 %v4843_v38, %v4467_v7  ;;  %v3089_v36 = vadd.f32 %v4823_v4, %v4473_v19 }
 0x242   : > { %v3865_v17 = vpop.eup %3864  ;;  %2681 = vst [vmem:[%s4515_s16 + $0x160] sm:$0xff] %v2617_v39  ;;  %3884 = vtanh.f32 %v3079_v54  ;;  %v2430_v10 = vadd.f32 1.0, %v3863_v3 }
 0x243   : > { %v3867_v34 = vpop.eup %3866  ;;  %v2618_v43 = vmul.f32 %v3865_v17, %v3861_v8  ;;  %3886 = vpow2.f32 %v3015_v30  ;;  %v3021_v30 = vmul.f32 -1.442695, %v3153_v63  ;;  %v3022_v17 = vmul.f32 -1.442695, %v3154_v9 }
 0x244   : > { %v3869_v13 = vpop.eup %3868  ;;  %3888 = vrcp.f32 %v2430_v10  ;;  %v3092_v63 = vadd.f32 %v4846_v45, %v4469_v11 }
 0x245   : > { %v3871_v33 = vpop.eup %3870  ;;  %2682 = vst [vmem:[%s4515_s16 + $0x168] sm:$0xff] %v2618_v43  ;;  %3890 = vtanh.f32 %v3080_v52  ;;  %v2431_v32 = vadd.f32 1.0, %v3869_v13  ;;  %v3086_v52 = vadd.f32 %v4806_v37, %v4469_v11  ;;  %v3087_v43 = vadd.f32 %v4811_v29, %v4473_v19 }
 0x246   : > { %v3873_v41 = vpop.eup %3872  ;;  %v2619_v28 = vmul.f32 %v3871_v33, %v3867_v34  ;;  %3892 = vpow2.f32 %v3016_v26  ;;  %v3156_v37 = vadd.f32 %v4848_v22, %v4465_v6  ;;  %v3157_v29 = vadd.f32 %v4852_v62, %v4467_v7 }
 0x247   : > { %v3875_v24 = vpop.eup %3874  ;;  %3894 = vrcp.f32 %v2431_v32 }
 0x248   : > { %v3877_v25 = vpop.eup %3876  ;;  %2683 = vst [vmem:[%s4515_s16 + $0x170] sm:$0xff] %v2619_v28  ;;  %3896 = vtanh.f32 %v3081_v2  ;;  %v2432_v55 = vadd.f32 1.0, %v3875_v24  ;;  %v3023_v2 = vmul.f32 -1.442695, %v3155_v47  ;;  %v3024_v22 = vmul.f32 -1.442695, %v3156_v37 }
 0x249   : > { %v3879_v59 = vpop.eup %3878  ;;  %v2620_v51 = vmul.f32 %v3877_v25, %v3873_v41  ;;  %3898 = vpow2.f32 %v3017_v16  ;;  %v3088_v16 = vadd.f32 %v4815_v14, %v4469_v11 }
 0x24a   : > { %v3881_v50 = vpop.eup %3880  ;;  %3900 = vrcp.f32 %v2432_v55  ;;  %v3025_v55 = vmul.f32 -1.442695, %v3157_v29 }
 0x24b   : > { %v3883_v35 = vpop.eup %3882  ;;  %2684 = vst [vmem:[%s4515_s16 + $0x178] sm:$0xff] %v2620_v51  ;;  %3902 = vtanh.f32 %v3082_v42  ;;  %v2433_v61 = vadd.f32 1.0, %v3881_v50  ;;  %v3090_v50 = vadd.f32 %v4833_v0, %v4469_v11 }
 0x24c   : > { %v3885_v48 = vpop.eup %3884  ;;  %v2621_v23 = vmul.f32 %v3883_v35, %v3879_v59  ;;  %3904 = vpow2.f32 %v3018_v31 }
 0x24d   : > { %v3887_v21 = vpop.eup %3886  ;;  %3906 = vrcp.f32 %v2433_v61 }
 0x24e   : > { %v3889_v57 = vpop.eup %3888  ;;  %2685 = vst [vmem:[%s4515_s16 + $0x180] sm:$0xff] %v2621_v23  ;;  %3908 = vtanh.f32 %v3083_v40  ;;  %v2434_v20 = vadd.f32 1.0, %v3887_v21 }
 0x24f   : > { %v3891_v15 = vpop.eup %3890  ;;  %v2622_v54 = vmul.f32 %v3889_v57, %v3885_v48  ;;  %3910 = vpow2.f32 %v3019_v44  ;;  %v3091_v44 = vadd.f32 %v4841_v27, %v4473_v19 }
 0x250   : > { %v3893_v58 = vpop.eup %3892  ;;  %3912 = vrcp.f32 %v2434_v20 }
 0x251   : > { %v3895_v49 = vpop.eup %3894  ;;  %2686 = vst [vmem:[%s4515_s16 + $0x188] sm:$0xff] %v2622_v54  ;;  %3914 = vtanh.f32 %v3084_v18  ;;  %v2435_v53 = vadd.f32 1.0, %v3893_v58  ;;  %v4983_v54 = vld [vmem:[#allocation2_spill] sm:$0xff] }
 0x252   : > { %v3897_v8 = vpop.eup %3896  ;;  %v2623_v39 = vmul.f32 %v3895_v49, %v3891_v15  ;;  %3916 = vpow2.f32 %v3020_v5  ;;  %v3093_v58 = vadd.f32 %v4983_v54, %v4473_v19 }
 0x253   : > { %v3899_v3 = vpop.eup %3898  ;;  %3918 = vrcp.f32 %v2435_v53 }
 0x254   : > { %v3901_v1 = vpop.eup %3900  ;;  %2687 = vst [vmem:[%s4515_s16 + $0x190] sm:$0xff] %v2623_v39  ;;  %3920 = vtanh.f32 %v3085_v56  ;;  %v2436_v60 = vadd.f32 1.0, %v3899_v3 }
 0x255   : > { %v3903_v10 = vpop.eup %3902  ;;  %v2624_v26 = vmul.f32 %v3901_v1, %v3897_v8  ;;  %3922 = vpow2.f32 %v3021_v30 }
 0x256   : > { %v3905_v34 = vpop.eup %3904  ;;  %3924 = vrcp.f32 %v2436_v60 }
 0x257   : > { %v3907_v13 = vpop.eup %3906  ;;  %2688 = vst [vmem:[%s4515_s16 + $0x198] sm:$0xff] %v2624_v26  ;;  %3926 = vtanh.f32 %v3086_v52  ;;  %v2437_v38 = vadd.f32 1.0, %v3905_v34 }
 0x258   : > { %v3909_v12 = vpop.eup %3908  ;;  %v2625_v33 = vmul.f32 %v3907_v13, %v3903_v10  ;;  %3928 = vpow2.f32 %v3022_v17 }
 0x259   : > { %v3911_v32 = vpop.eup %3910  ;;  %3930 = vrcp.f32 %v2437_v38 }
 0x25a   : > { %v3913_v41 = vpop.eup %3912  ;;  %2689 = vst [vmem:[%s4515_s16 + $0x1a0] sm:$0xff] %v2625_v33  ;;  %3932 = vtanh.f32 %v3087_v43  ;;  %v2438_v6 = vadd.f32 1.0, %v3911_v32 }
 0x25b   : > { %v3915_v28 = vpop.eup %3914  ;;  %v2626_v24 = vmul.f32 %v3913_v41, %v3909_v12  ;;  %3934 = vpow2.f32 %v3023_v2 }
 0x25c   : > { %v3917_v42 = vpop.eup %3916  ;;  %3936 = vrcp.f32 %v2438_v6 }
 0x25d   : > { %v3919_v25 = vpop.eup %3918  ;;  %2690 = vst [vmem:[%s4515_s16 + $0x1a8] sm:$0xff] %v2626_v24  ;;  %3938 = vtanh.f32 %v3088_v16  ;;  %v2439_v14 = vadd.f32 1.0, %v3917_v42 }
 0x25e   : > { %v3921_v7 = vpop.eup %3920  ;;  %v2627_v62 = vmul.f32 %v3919_v25, %v3915_v28  ;;  %3940 = vpow2.f32 %v3024_v22 }
 0x25f   : > { %v3923_v31 = vpop.eup %3922  ;;  %3942 = vrcp.f32 %v2439_v14 }
 0x260   : > { %v3925_v59 = vpop.eup %3924  ;;  %2691 = vst [vmem:[%s4515_s16 + $0x1b0] sm:$0xff] %v2627_v62  ;;  %3944 = vtanh.f32 %v3089_v36  ;;  %v2440_v51 = vadd.f32 1.0, %v3923_v31 }
 0x261   : > { %v3927_v4 = vpop.eup %3926  ;;  %v2628_v40 = vmul.f32 %v3925_v59, %v3921_v7  ;;  %3946 = vpow2.f32 %v3025_v55 }
 0x262   : > { %v3929_v46 = vpop.eup %3928  ;;  %3948 = vrcp.f32 %v2440_v51 }
 0x263   : > { %v3931_v35 = vpop.eup %3930  ;;  %2692 = vst [vmem:[%s4515_s16 + $0x1b8] sm:$0xff] %v2628_v40  ;;  %v2441_v61 = vadd.f32 1.0, %v3929_v46  ;;  %3950 = vtanh.f32 %v3090_v50 }
 0x264   : > { %v3933_v48 = vpop.eup %3932  ;;  %v2629_v23 = vmul.f32 %v3931_v35, %v3927_v4 }
 0x265   : > { %v3935_v21 = vpop.eup %3934  ;;  %3952 = vrcp.f32 %v2441_v61 }
 0x266   : > { %v3937_v18 = vpop.eup %3936  ;;  %2693 = vst [vmem:[%s4515_s16 + $0x1c0] sm:$0xff] %v2629_v23  ;;  %v2442_v0 = vadd.f32 1.0, %v3935_v21  ;;  %3954 = vtanh.f32 %v3091_v44 }
 0x267   : > { %v3939_v57 = vpop.eup %3938  ;;  %v2630_v20 = vmul.f32 %v3937_v18, %v3933_v48 }
 0x268   : > { %v3941_v5 = vpop.eup %3940  ;;  %3956 = vrcp.f32 %v2442_v0 }
 0x269   : > { %v3943_v15 = vpop.eup %3942  ;;  %2694 = vst [vmem:[%s4515_s16 + $0x1c8] sm:$0xff] %v2630_v20  ;;  %v2443_v27 = vadd.f32 1.0, %v3941_v5  ;;  %3958 = vtanh.f32 %v3092_v63 }
 0x26a   : > { %v3945_v56 = vpop.eup %3944  ;;  %v2631_v9 = vmul.f32 %v3943_v15, %v3939_v57 }
 0x26b   : > { %v3947_v49 = vpop.eup %3946  ;;  %3960 = vrcp.f32 %v2443_v27 }
 0x26c   : > { %v3949_v11 = vpop.eup %3948  ;;  %2695 = vst [vmem:[%s4515_s16 + $0x1d0] sm:$0xff] %v2631_v9  ;;  %v2444_v45 = vadd.f32 1.0, %v3947_v49  ;;  %3962 = vtanh.f32 %v3093_v58 }
 0x26d   : > { %v2632_v53 = vmul.f32 %v3949_v11, %v3945_v56  ;;  %v3951_v30 = vpop.eup %3950 }
 0x26e   : > { %3964 = vrcp.f32 %v2444_v45 }
 0x26f   : > { %v3953_v8 = vpop.eup %3952  ;;  %2696 = vst [vmem:[%s4515_s16 + $0x1d8] sm:$0xff] %v2632_v53 }
 0x270   : > { %v2633_v39 = vmul.f32 %v3953_v8, %v3951_v30  ;;  %v3955_v19 = vpop.eup %3954 }
 0x272   : > { %v3957_v3 = vpop.eup %3956  ;;  %2697 = vst [vmem:[%s4515_s16 + $0x1e0] sm:$0xff] %v2633_v39 }
 0x273   : > { %v2634_v52 = vmul.f32 %v3957_v3, %v3955_v19  ;;  %v3959_v47 = vpop.eup %3958 }
 0x275   : > { %v3961_v1 = vpop.eup %3960  ;;  %2698 = vst [vmem:[%s4515_s16 + $0x1e8] sm:$0xff] %v2634_v52 }
 0x276   : > { %v2635_v60 = vmul.f32 %v3961_v1, %v3959_v47  ;;  %v3963_v17 = vpop.eup %3962 }
 0x278   : > { %v3965_v10 = vpop.eup %3964  ;;  %2699 = vst [vmem:[%s4515_s16 + $0x1f0] sm:$0xff] %v2635_v60 }
 0x279   : > { %v2636_v26 = vmul.f32 %v3965_v10, %v3963_v17 }
 0x27b   : > { %2700 = vst [vmem:[%s4515_s16 + $0x1f8] sm:$0xff] %v2636_v26 }
 0x27c PF: > { %s13_s12 = sadd.s32 1, %s3972_s12  }
 0x27d   : > { %p10_p4 = scmp.ge.s32.totalorder %s13_s12, 4  }
 0x27f   :  { %12 = sbr.rel (!%p10_p4) target bundleno = 1 (0x1), region = 62 }

</bundles_post_ra>
